<compile_context>
chip_gen: v7x
topology: tpu7x:2x2x1
jax: 0.10.0
libtpu: 0.0.40
codegen_flags: <defaults>
</compile_context>

<pallas_src>
import math
import functools

import numpy as np
import jax
import jax.numpy as jnp
from jax import lax
from jax.experimental import pallas as pl
from jax.experimental.pallas import tpu as pltpu


def _round_up(n, m):
    return ((n + m - 1) // m) * m


def _pick_vmem_limit():
    """~3/4 of physical VMEM, capped at 100 MiB (96 MiB on v5e/v6e, 48 MiB on v7x)."""
    try:
        cap = pltpu.get_tpu_info().vmem_capacity_bytes
        return min(int(cap * 3 // 4), 100 * 1024 * 1024)
    except Exception:
        return 48 * 1024 * 1024


def _pick_block_b(B):
    """Largest divisor of B that (a) respects the per-generation VMEM budget heuristic
    (~8 examples per step on v5e/v6e, ~4 on v7x's 64 MiB VMEM) and (b) keeps >= 2 grid
    steps so both v7x TensorCores get work and the pipeline has a next step to prefetch.
    """
    try:
        vmem = pltpu.get_tpu_info().vmem_capacity_bytes
        target = 4 if vmem <= 64 * 1024 * 1024 else 8
    except Exception:
        target = 4
    best = 1
    for d in range(1, B + 1):
        if B % d == 0 and d <= target and B // d >= 2:
            best = d
    return best


def _const_index_map(ndim):
    return lambda b: (0,) * ndim


def _rep_spec(a, single_buffer):
    """Full-array (replicated) block; constant index map -> DMA'd once, not per step.
    single_buffer=True additionally requests Buffered(1) so the constant weights are not
    double-buffered (halves their VMEM footprint; matters most on v7x)."""
    imap = _const_index_map(a.ndim)
    if single_buffer:
        return pl.BlockSpec(a.shape, imap, pipeline_mode=pl.Buffered(1))
    return pl.BlockSpec(a.shape, imap)


def _make_bottle2neck_kernel(scale, width, nums, K, dilation, pad, T_valid,
                             compute_dtype=jnp.bfloat16):
    def kernel(x_ref,
               w1_ref, b1_ref, s1_ref, t1_ref,
               wc_ref, bc_ref, sc_ref, tc_ref,
               w3_ref, b3_ref, s3_ref, t3_ref,
               sw1_ref, sb1_ref, sw2_ref, sb2_ref,
               out_ref):
        x = x_ref[...]                                   # (Bb, Tp, Cin) f32
        Bb, Tp, _ = x.shape

        def mm(a_c, w_c):
            # Collapse (b, t) into one M dimension -> a single large-M MXU matmul.
            # Inputs are already in compute_dtype (bf16); accumulate in f32.
            m_rows = Bb * a_c.shape[1]
            r = jnp.dot(a_c.reshape(m_rows, a_c.shape[-1]), w_c,
                        preferred_element_type=jnp.float32)
            return r.reshape(Bb, a_c.shape[1], -1)

        # ---- conv1 (1x1) -> ReLU -> folded BN1 ----
        h = mm(x.astype(compute_dtype), w1_ref[...]) + b1_ref[...]
        h = jnp.maximum(h, 0.0) * s1_ref[...] + t1_ref[...]   # (Bb, Tp, width*scale) f32

        # Tap offsets and edge-validity masks are identical for every branch -> hoisted
        # out of the branch loop (computed once per grid step).
        t_idx = lax.broadcasted_iota(jnp.int32, (1, Tp, 1), 1)
        tap_offsets = [k * dilation - pad for k in range(K)]
        tap_valid = {off: (t_idx + off >= 0) & (t_idx + off < T_valid)
                     for off in tap_offsets if off != 0}

        # ---- res2net branches ----
        # Branch outputs are staged in bf16 in conv3's input (concat) order so conv3 can
        # run as ONE deep-K (scale*width) contraction afterwards.
        stage = []
        sp = None
        for i in range(nums):
            spx_i = h[:, :, i * width:(i + 1) * width]
            sp = spx_i if i == 0 else sp + spx_i
            # K shifted taps: XLU roll (f32) + zero mask at the true sequence edges,
            # cast to bf16 before the concat, then one (K*width)-deep MXU contraction.
            taps = []
            for off in tap_offsets:
                if off == 0:
                    taps.append(sp.astype(compute_dtype))
                else:
                    rolled = pltpu.roll(sp, shift=(-off) % Tp, axis=1)
                    taps.append(
                        jnp.where(tap_valid[off], rolled, 0.0).astype(compute_dtype))
            taps = jnp.concatenate(taps, axis=-1)             # (Bb, Tp, K*width) bf16
            z = mm(taps, wc_ref[i]) + bc_ref[i]
            sp = jnp.maximum(z, 0.0) * sc_ref[i] + tc_ref[i]  # branch ReLU + folded BN
            stage.append(sp.astype(compute_dtype))
        # last split passes through untouched, straight into conv3
        stage.append(h[:, :, nums * width:scale * width].astype(compute_dtype))
        stage = jnp.concatenate(stage, axis=-1)               # (Bb, Tp, scale*width)

        # ---- conv3 (1x1) as a single deep-K MXU contraction -> ReLU -> folded BN3 ----
        out = mm(stage, w3_ref[...]) + b3_ref[...]
        out = jnp.maximum(out, 0.0) * s3_ref[...] + t3_ref[...]   # (Bb, Tp, planes) f32

        # ---- SE (standard): global mean over the VALID T, 1x1 -> ReLU -> 1x1 ->
        # sigmoid, gate broadcast over T.  bf16 matmuls, f32 accumulation. ----
        if T_valid == Tp:
            m = jnp.mean(out, axis=1, keepdims=True)           # (Bb, 1, planes)
        else:
            tmask = (t_idx < T_valid).astype(jnp.float32)
            m = jnp.sum(out * tmask, axis=1, keepdims=True) * (1.0 / T_valid)
        z = jnp.maximum(mm(m.astype(compute_dtype), sw1_ref[...]) + sb1_ref[...], 0.0)
        gate = jax.nn.sigmoid(mm(z.astype(compute_dtype), sw2_ref[...]) + sb2_ref[...])
        out = out * gate

        # ---- residual ----
        out_ref[...] = (out + x).astype(out_ref.dtype)

    return kernel


def init_bottle2neck_params(key, inplanes, planes, kernel_size=3, dilation=1,
                            scale=8, bottleneck=128, eps=1e-5):
    """Random params in the kernel's layout.

    Weight layout (vs. PyTorch):
      w1[c_in, c_out]            = conv1.weight[c_out, c_in, 0]
      wc[i, k*width + c_in, c_o] = convs[i].weight[c_o, c_in, k]
      w3[s*width + c, o]         = conv3.weight[o, s*width + c, 0]
      sw1[c, o] / sw2[c, o]      = se conv weights transposed.
    BatchNorm is folded to y = relu(conv) * s + t with
      s = gamma / sqrt(running_var + eps),  t = beta - running_mean * s
    (defaults gamma=1, beta=0, mean=0, var=1 -> eval-mode semantics).
    """
    assert scale > 1, "this kernel assumes the res2net branches are enabled (scale > 1)"
    width = int(math.floor(planes / scale))
    nums = scale - 1
    pad = math.floor(kernel_size / 2) * dilation
    ks = jax.random.split(key, 8)
    f32, bf16 = jnp.float32, jnp.bfloat16

    def nrm(k, shape, s=0.2):
        return (s * jax.random.normal(k, shape)).astype(f32)

    def fold_bn(n):
        gamma = jnp.ones((1, n), f32)
        beta = jnp.zeros((1, n), f32)
        rmean = jnp.zeros((1, n), f32)
        rvar = jnp.ones((1, n), f32)
        s = gamma / jnp.sqrt(rvar + eps)
        t = beta - rmean * s
        return s, t

    s1, t1 = fold_bn(width * scale)
    s3, t3 = fold_bn(planes)
    sb, tb = fold_bn(width)

    params = dict(
        w1=nrm(ks[0], (inplanes, width * scale)).astype(bf16),
        b1=nrm(ks[1], (1, width * scale), 0.05),
        s1=s1, t1=t1,
        wc=nrm(ks[2], (nums, kernel_size * width, width)).astype(bf16),
        bc=nrm(ks[3], (nums, 1, width), 0.05),
        sc=jnp.tile(sb[None], (nums, 1, 1)),
        tc=jnp.tile(tb[None], (nums, 1, 1)),
        w3=nrm(ks[4], (scale * width, planes)).astype(bf16),   # conv3 as one deep K
        b3=nrm(ks[5], (1, planes), 0.05),
        s3=s3, t3=t3,
        sw1=nrm(ks[6], (planes, bottleneck)).astype(bf16),
        sb1=jnp.zeros((1, bottleneck), f32),
        sw2=nrm(ks[7], (bottleneck, planes)).astype(bf16),
        sb2=jnp.zeros((1, planes), f32),
    )
    cfg = dict(scale=scale, width=width, nums=nums, K=kernel_size,
               dilation=dilation, pad=pad)
    return params, cfg


_PARAM_ORDER = ("w1", "b1", "s1", "t1",
                "wc", "bc", "sc", "tc",
                "w3", "b3", "s3", "t3",
                "sw1", "sb1", "sw2", "sb2")


@functools.partial(jax.jit, static_argnames=("scale", "width", "nums", "K", "dilation",
                                             "pad", "block_b", "single_buffer_weights"))
def _forward_impl(x_btc, params, *, scale, width, nums, K, dilation, pad,
                  block_b, single_buffer_weights):
    B, T, Cin = x_btc.shape
    planes = params["s3"].shape[-1]
    assert planes == Cin, "residual add requires planes == inplanes"
    assert B % block_b == 0, "B must be divisible by the batch block size"

    # Pad T to a multiple of 16 (bf16 sublane packing) so (b, t) collapses freely into
    # one matmul M dimension; the kernel masks padded rows out of the dilated-conv taps
    # and the SE mean, and the wrapper slices them off the output.
    Tp = _round_up(T, 16)
    x_p = x_btc if Tp == T else jnp.pad(x_btc, ((0, 0), (0, Tp - T), (0, 0)))

    args = (x_p,) + tuple(params[k] for k in _PARAM_ORDER)
    in_specs = [pl.BlockSpec((block_b, Tp, Cin), lambda b: (b, 0, 0))]
    in_specs += [_rep_spec(params[k], single_buffer_weights) for k in _PARAM_ORDER]
    out_spec = pl.BlockSpec((block_b, Tp, planes), lambda b: (b, 0, 0))

    kernel = _make_bottle2neck_kernel(scale, width, nums, K, dilation, pad, T_valid=T)

    y = pl.pallas_call(
        kernel,
        out_shape=jax.ShapeDtypeStruct((B, Tp, planes), x_btc.dtype),
        grid=(B // block_b,),
        in_specs=in_specs,
        out_specs=out_spec,
        compiler_params=pltpu.CompilerParams(
            dimension_semantics=("parallel",),
            vmem_limit_bytes=_pick_vmem_limit()),
    )(*args)
    return y if Tp == T else y[:, :T, :]


def bottle2neck_forward_btc(x_btc, params, cfg, block_b=None):
    """x_btc: (B, T, C) channels-last.  Returns (B, T, planes), same dtype as x.
    NOTE: pass/keep activations in bf16 between blocks to halve HBM traffic (v6e)."""
    if block_b is None:
        block_b = _pick_block_b(x_btc.shape[0])
    try:
        return _forward_impl(x_btc, params, block_b=block_b,
                             single_buffer_weights=True, **cfg)
    except Exception:
        # pipeline_mode=pl.Buffered(1) not supported on this jax/Mosaic version ->
        # fall back to default double-buffered weight specs (identical results).
        return _forward_impl(x_btc, params, block_b=block_b,
                             single_buffer_weights=False, **cfg)


def bottle2neck_forward_nct(x_nct, params, cfg, block_b=None):
    """PyTorch-layout wrapper: (B, C, T) -> (B, C, T).
    NOTE: the standalone transposes are HBM round-trips; in a full network keep
    activations in (B, T, C) and call bottle2neck_forward_btc directly."""
    x_btc = jnp.transpose(x_nct, (0, 2, 1))
    y_btc = bottle2neck_forward_btc(x_btc, params, cfg, block_b=block_b)
    return jnp.transpose(y_btc, (0, 2, 1))


def _reference_btc(x, params, cfg):
    """Pure-JAX f32 reference (independent explicit zero-pad conv; no rolls)."""
    scale, width, nums = cfg["scale"], cfg["width"], cfg["nums"]
    K, dilation, pad = cfg["K"], cfg["dilation"], cfg["pad"]
    f32 = jnp.float32
    T = x.shape[1]

    def mm(a, w):
        return jnp.einsum("btc,co->bto", a, w.astype(f32))

    h = jnp.maximum(mm(x, params["w1"]) + params["b1"], 0.0)
    h = h * params["s1"] + params["t1"]
    stage, sp = [], None
    for i in range(nums):
        spx_i = h[:, :, i * width:(i + 1) * width]
        sp = spx_i if i == 0 else sp + spx_i
        spp = jnp.pad(sp, ((0, 0), (pad, pad), (0, 0)))
        taps = jnp.concatenate([spp[:, k * dilation:k * dilation + T, :]
                                for k in range(K)], axis=-1)
        z = mm(taps, params["wc"][i]) + params["bc"][i]
        sp = jnp.maximum(z, 0.0) * params["sc"][i] + params["tc"][i]
        stage.append(sp)
    stage.append(h[:, :, nums * width:scale * width])
    stage = jnp.concatenate(stage, axis=-1)
    out = jnp.maximum(mm(stage, params["w3"]) + params["b3"], 0.0)
    out = out * params["s3"] + params["t3"]
    m = jnp.mean(out, axis=1, keepdims=True)
    z = jnp.maximum(mm(m, params["sw1"]) + params["sb1"], 0.0)
    gate = jax.nn.sigmoid(mm(z, params["sw2"]) + params["sb2"])
    return out * gate + x


if __name__ == "__main__":
    key = jax.random.PRNGKey(0)

    def run_case(B, C, T, scale, kernel_size, dilation, bottleneck, sub):
        kx, kp = jax.random.split(jax.random.fold_in(key, sub))
        x_nct = jax.random.normal(kx, (B, C, T), jnp.float32)   # PyTorch NCT input
        params, cfg = init_bottle2neck_params(kp, C, C, kernel_size=kernel_size,
                                              dilation=dilation, scale=scale,
                                              bottleneck=bottleneck)
        y = bottle2neck_forward_nct(x_nct, params, cfg)
        y = jax.block_until_ready(y)
        assert y.shape == (B, C, T), y.shape
        assert bool(jnp.all(jnp.isfinite(y)))
        # bf16 matmuls (f32 accumulation) vs f32 reference -> loose tolerances.
        ref = _reference_btc(jnp.transpose(x_nct, (0, 2, 1)), params, cfg)
        ref = jnp.transpose(ref, (0, 2, 1))
        np.testing.assert_allclose(np.asarray(y, np.float32), np.asarray(ref),
                                   rtol=0.05, atol=0.1)

    # Residual add requires inplanes == planes.  Case 1: dilated branch convs, T already
    # a multiple of 16.  Case 2: T=19 exercises the T-padding / masked-SE-mean path.
    run_case(B=2, C=16, T=16, scale=4, kernel_size=3, dilation=2, bottleneck=32, sub=0)
    run_case(B=2, C=16, T=19, scale=4, kernel_size=3, dilation=1, bottleneck=32, sub=1)

    print("KERNEL_OK")
</pallas_src>

<mosaic_0001>
module attributes {stable_mosaic.version = 11 : i64} {
  func.func @kernel(%arg0: i32, %arg1: memref<1x16x16xf32, #tpu.memory_space<vmem>>, %arg2: memref<16x16xbf16, #tpu.memory_space<vmem>>, %arg3: memref<1x16xf32, #tpu.memory_space<vmem>>, %arg4: memref<1x16xf32, #tpu.memory_space<vmem>>, %arg5: memref<1x16xf32, #tpu.memory_space<vmem>>, %arg6: memref<3x12x4xbf16, #tpu.memory_space<vmem>>, %arg7: memref<3x1x4xf32, #tpu.memory_space<vmem>>, %arg8: memref<3x1x4xf32, #tpu.memory_space<vmem>>, %arg9: memref<3x1x4xf32, #tpu.memory_space<vmem>>, %arg10: memref<16x16xbf16, #tpu.memory_space<vmem>>, %arg11: memref<1x16xf32, #tpu.memory_space<vmem>>, %arg12: memref<1x16xf32, #tpu.memory_space<vmem>>, %arg13: memref<1x16xf32, #tpu.memory_space<vmem>>, %arg14: memref<16x32xbf16, #tpu.memory_space<vmem>>, %arg15: memref<1x32xf32, #tpu.memory_space<vmem>>, %arg16: memref<32x16xbf16, #tpu.memory_space<vmem>>, %arg17: memref<1x16xf32, #tpu.memory_space<vmem>>, %arg18: memref<1x16x16xf32, #tpu.memory_space<vmem>>) attributes {dimension_semantics = [#tpu.dimension_semantics<parallel>], iteration_bounds = array<i64: 2>, scalar_prefetch = 0 : i64, scratch_operands = 0 : i64, tpu.core_type = #tpu.core_type<tc>, window_params = [{transform_indices = @transform_0, window_bounds = array<i64: 1, 16, 16>}, {pipeline_mode = #tpu.pipeline_mode<synchronous>, transform_indices = @transform_1, window_bounds = array<i64: 16, 16>}, {pipeline_mode = #tpu.pipeline_mode<synchronous>, transform_indices = @transform_2, window_bounds = array<i64: 1, 16>}, {pipeline_mode = #tpu.pipeline_mode<synchronous>, transform_indices = @transform_3, window_bounds = array<i64: 1, 16>}, {pipeline_mode = #tpu.pipeline_mode<synchronous>, transform_indices = @transform_4, window_bounds = array<i64: 1, 16>}, {pipeline_mode = #tpu.pipeline_mode<synchronous>, transform_indices = @transform_5, window_bounds = array<i64: 3, 12, 4>}, {pipeline_mode = #tpu.pipeline_mode<synchronous>, transform_indices = @transform_6, window_bounds = array<i64: 3, 1, 4>}, {pipeline_mode = #tpu.pipeline_mode<synchronous>, transform_indices = @transform_7, window_bounds = array<i64: 3, 1, 4>}, {pipeline_mode = #tpu.pipeline_mode<synchronous>, transform_indices = @transform_8, window_bounds = array<i64: 3, 1, 4>}, {pipeline_mode = #tpu.pipeline_mode<synchronous>, transform_indices = @transform_9, window_bounds = array<i64: 16, 16>}, {pipeline_mode = #tpu.pipeline_mode<synchronous>, transform_indices = @transform_10, window_bounds = array<i64: 1, 16>}, {pipeline_mode = #tpu.pipeline_mode<synchronous>, transform_indices = @transform_11, window_bounds = array<i64: 1, 16>}, {pipeline_mode = #tpu.pipeline_mode<synchronous>, transform_indices = @transform_12, window_bounds = array<i64: 1, 16>}, {pipeline_mode = #tpu.pipeline_mode<synchronous>, transform_indices = @transform_13, window_bounds = array<i64: 16, 32>}, {pipeline_mode = #tpu.pipeline_mode<synchronous>, transform_indices = @transform_14, window_bounds = array<i64: 1, 32>}, {pipeline_mode = #tpu.pipeline_mode<synchronous>, transform_indices = @transform_15, window_bounds = array<i64: 32, 16>}, {pipeline_mode = #tpu.pipeline_mode<synchronous>, transform_indices = @transform_16, window_bounds = array<i64: 1, 16>}, {transform_indices = @transform_17, window_bounds = array<i64: 1, 16, 16>}]} {
    %c0 = arith.constant 0 : index
    %c0_0 = arith.constant 0 : index
    %c0_1 = arith.constant 0 : index
    %0 = vector.load %arg1[%c0, %c0_0, %c0_1] : memref<1x16x16xf32, #tpu.memory_space<vmem>>, vector<1x16x16xf32>
    %1 = arith.truncf %0 : vector<1x16x16xf32> to vector<1x16x16xbf16>
    %c0_2 = arith.constant 0 : index
    %c0_3 = arith.constant 0 : index
    %2 = vector.load %arg2[%c0_2, %c0_3] : memref<16x16xbf16, #tpu.memory_space<vmem>>, vector<16x16xbf16>
    %3 = vector.shape_cast %1 : vector<1x16x16xbf16> to vector<16x16xbf16>
    %cst = arith.constant dense<0.000000e+00> : vector<16x16xf32>
    %4 = tpu.matmul %3, %2, %cst {dimension_numbers = #tpu.dot_dimension_numbers<[1], [0], [0], [1], [0, 0, 1, 1], [], []>} : vector<16x16xbf16>, vector<16x16xbf16>, vector<16x16xf32> -> vector<16x16xf32>
    %5 = vector.shape_cast %4 : vector<16x16xf32> to vector<1x16x16xf32>
    %c0_4 = arith.constant 0 : index
    %c0_5 = arith.constant 0 : index
    %6 = vector.load %arg3[%c0_4, %c0_5] : memref<1x16xf32, #tpu.memory_space<vmem>>, vector<1x16xf32>
    %7 = vector.shape_cast %6 : vector<1x16xf32> to vector<1x1x16xf32>
    %8 = vector.broadcast %7 : vector<1x1x16xf32> to vector<1x16x16xf32>
    %9 = arith.addf %5, %8 : vector<1x16x16xf32>
    %cst_6 = arith.constant 0.000000e+00 : f32
    %10 = vector.broadcast %cst_6 : f32 to vector<1x16x16xf32>
    %11 = arith.maximumf %9, %10 : vector<1x16x16xf32>
    %c0_7 = arith.constant 0 : index
    %c0_8 = arith.constant 0 : index
    %12 = vector.load %arg4[%c0_7, %c0_8] : memref<1x16xf32, #tpu.memory_space<vmem>>, vector<1x16xf32>
    %13 = vector.shape_cast %12 : vector<1x16xf32> to vector<1x1x16xf32>
    %14 = vector.broadcast %13 : vector<1x1x16xf32> to vector<1x16x16xf32>
    %15 = arith.mulf %11, %14 : vector<1x16x16xf32>
    %c0_9 = arith.constant 0 : index
    %c0_10 = arith.constant 0 : index
    %16 = vector.load %arg5[%c0_9, %c0_10] : memref<1x16xf32, #tpu.memory_space<vmem>>, vector<1x16xf32>
    %17 = vector.shape_cast %16 : vector<1x16xf32> to vector<1x1x16xf32>
    %18 = vector.broadcast %17 : vector<1x1x16xf32> to vector<1x16x16xf32>
    %19 = arith.addf %15, %18 : vector<1x16x16xf32>
    %20 = tpu.iota {dimensions = array<i32: 1>} : vector<1x16x1xi32>
    %c-2_i32 = arith.constant -2 : i32
    %21 = vector.broadcast %c-2_i32 : i32 to vector<1x16x1xi32>
    %22 = arith.addi %20, %21 : vector<1x16x1xi32>
    %c0_i32 = arith.constant 0 : i32
    %23 = vector.broadcast %c0_i32 : i32 to vector<1x16x1xi32>
    %24 = arith.cmpi sge, %22, %23 : vector<1x16x1xi32>
    %c-2_i32_11 = arith.constant -2 : i32
    %25 = vector.broadcast %c-2_i32_11 : i32 to vector<1x16x1xi32>
    %26 = arith.addi %20, %25 : vector<1x16x1xi32>
    %c16_i32 = arith.constant 16 : i32
    %27 = vector.broadcast %c16_i32 : i32 to vector<1x16x1xi32>
    %28 = arith.cmpi slt, %26, %27 : vector<1x16x1xi32>
    %29 = arith.andi %24, %28 : vector<1x16x1xi1>
    %c2_i32 = arith.constant 2 : i32
    %30 = vector.broadcast %c2_i32 : i32 to vector<1x16x1xi32>
    %31 = arith.addi %20, %30 : vector<1x16x1xi32>
    %c0_i32_12 = arith.constant 0 : i32
    %32 = vector.broadcast %c0_i32_12 : i32 to vector<1x16x1xi32>
    %33 = arith.cmpi sge, %31, %32 : vector<1x16x1xi32>
    %c2_i32_13 = arith.constant 2 : i32
    %34 = vector.broadcast %c2_i32_13 : i32 to vector<1x16x1xi32>
    %35 = arith.addi %20, %34 : vector<1x16x1xi32>
    %c16_i32_14 = arith.constant 16 : i32
    %36 = vector.broadcast %c16_i32_14 : i32 to vector<1x16x1xi32>
    %37 = arith.cmpi slt, %35, %36 : vector<1x16x1xi32>
    %38 = arith.andi %33, %37 : vector<1x16x1xi1>
    %39 = vector.extract_strided_slice %19 {offsets = [0, 0, 0], sizes = [1, 16, 4], strides = [1, 1, 1]} : vector<1x16x16xf32> to vector<1x16x4xf32>
    %c2_i32_15 = arith.constant 2 : i32
    %40 = tpu.dynamic_rotate %39 by %c2_i32_15 dim 1 : vector<1x16x4xf32>, i32 -> vector<1x16x4xf32>
    %cst_16 = arith.constant 0.000000e+00 : f32
    %41 = vector.shape_cast %29 : vector<1x16x1xi1> to vector<1x16x1xi1>
    %42 = vector.broadcast %41 : vector<1x16x1xi1> to vector<1x16x4xi1>
    %43 = vector.broadcast %cst_16 : f32 to vector<1x16x4xf32>
    %44 = arith.select %42, %40, %43 : vector<1x16x4xi1>, vector<1x16x4xf32>
    %45 = arith.truncf %44 : vector<1x16x4xf32> to vector<1x16x4xbf16>
    %46 = arith.truncf %39 : vector<1x16x4xf32> to vector<1x16x4xbf16>
    %c14_i32 = arith.constant 14 : i32
    %47 = tpu.dynamic_rotate %39 by %c14_i32 dim 1 : vector<1x16x4xf32>, i32 -> vector<1x16x4xf32>
    %cst_17 = arith.constant 0.000000e+00 : f32
    %48 = vector.shape_cast %38 : vector<1x16x1xi1> to vector<1x16x1xi1>
    %49 = vector.broadcast %48 : vector<1x16x1xi1> to vector<1x16x4xi1>
    %50 = vector.broadcast %cst_17 : f32 to vector<1x16x4xf32>
    %51 = arith.select %49, %47, %50 : vector<1x16x4xi1>, vector<1x16x4xf32>
    %52 = arith.truncf %51 : vector<1x16x4xf32> to vector<1x16x4xbf16>
    %53 = tpu.concatenate %45, %46, %52 in 2 : vector<1x16x4xbf16>, vector<1x16x4xbf16>, vector<1x16x4xbf16> -> vector<1x16x12xbf16>
    %c0_18 = arith.constant 0 : index
    %c0_19 = arith.constant 0 : index
    %c0_20 = arith.constant 0 : index
    %54 = vector.load %arg6[%c0_18, %c0_19, %c0_20] : memref<3x12x4xbf16, #tpu.memory_space<vmem>>, vector<1x12x4xbf16>
    %55 = vector.shape_cast %54 : vector<1x12x4xbf16> to vector<12x4xbf16>
    %56 = vector.shape_cast %53 : vector<1x16x12xbf16> to vector<16x12xbf16>
    %cst_21 = arith.constant dense<0.000000e+00> : vector<16x4xf32>
    %57 = tpu.matmul %56, %55, %cst_21 {dimension_numbers = #tpu.dot_dimension_numbers<[1], [0], [0], [1], [0, 0, 1, 1], [], []>} : vector<16x12xbf16>, vector<12x4xbf16>, vector<16x4xf32> -> vector<16x4xf32>
    %58 = vector.shape_cast %57 : vector<16x4xf32> to vector<1x16x4xf32>
    %c0_22 = arith.constant 0 : index
    %c0_23 = arith.constant 0 : index
    %c0_24 = arith.constant 0 : index
    %59 = vector.load %arg7[%c0_22, %c0_23, %c0_24] : memref<3x1x4xf32, #tpu.memory_space<vmem>>, vector<1x1x4xf32>
    %60 = vector.shape_cast %59 : vector<1x1x4xf32> to vector<1x4xf32>
    %61 = vector.shape_cast %60 : vector<1x4xf32> to vector<1x1x4xf32>
    %62 = vector.broadcast %61 : vector<1x1x4xf32> to vector<1x16x4xf32>
    %63 = arith.addf %58, %62 : vector<1x16x4xf32>
    %cst_25 = arith.constant 0.000000e+00 : f32
    %64 = vector.broadcast %cst_25 : f32 to vector<1x16x4xf32>
    %65 = arith.maximumf %63, %64 : vector<1x16x4xf32>
    %c0_26 = arith.constant 0 : index
    %c0_27 = arith.constant 0 : index
    %c0_28 = arith.constant 0 : index
    %66 = vector.load %arg8[%c0_26, %c0_27, %c0_28] : memref<3x1x4xf32, #tpu.memory_space<vmem>>, vector<1x1x4xf32>
    %67 = vector.shape_cast %66 : vector<1x1x4xf32> to vector<1x4xf32>
    %68 = vector.shape_cast %67 : vector<1x4xf32> to vector<1x1x4xf32>
    %69 = vector.broadcast %68 : vector<1x1x4xf32> to vector<1x16x4xf32>
    %70 = arith.mulf %65, %69 : vector<1x16x4xf32>
    %c0_29 = arith.constant 0 : index
    %c0_30 = arith.constant 0 : index
    %c0_31 = arith.constant 0 : index
    %71 = vector.load %arg9[%c0_29, %c0_30, %c0_31] : memref<3x1x4xf32, #tpu.memory_space<vmem>>, vector<1x1x4xf32>
    %72 = vector.shape_cast %71 : vector<1x1x4xf32> to vector<1x4xf32>
    %73 = vector.shape_cast %72 : vector<1x4xf32> to vector<1x1x4xf32>
    %74 = vector.broadcast %73 : vector<1x1x4xf32> to vector<1x16x4xf32>
    %75 = arith.addf %70, %74 : vector<1x16x4xf32>
    %76 = arith.truncf %75 : vector<1x16x4xf32> to vector<1x16x4xbf16>
    %77 = vector.extract_strided_slice %19 {offsets = [0, 0, 4], sizes = [1, 16, 4], strides = [1, 1, 1]} : vector<1x16x16xf32> to vector<1x16x4xf32>
    %78 = arith.addf %75, %77 : vector<1x16x4xf32>
    %c2_i32_32 = arith.constant 2 : i32
    %79 = tpu.dynamic_rotate %78 by %c2_i32_32 dim 1 : vector<1x16x4xf32>, i32 -> vector<1x16x4xf32>
    %cst_33 = arith.constant 0.000000e+00 : f32
    %80 = vector.shape_cast %29 : vector<1x16x1xi1> to vector<1x16x1xi1>
    %81 = vector.broadcast %80 : vector<1x16x1xi1> to vector<1x16x4xi1>
    %82 = vector.broadcast %cst_33 : f32 to vector<1x16x4xf32>
    %83 = arith.select %81, %79, %82 : vector<1x16x4xi1>, vector<1x16x4xf32>
    %84 = arith.truncf %83 : vector<1x16x4xf32> to vector<1x16x4xbf16>
    %85 = arith.truncf %78 : vector<1x16x4xf32> to vector<1x16x4xbf16>
    %c14_i32_34 = arith.constant 14 : i32
    %86 = tpu.dynamic_rotate %78 by %c14_i32_34 dim 1 : vector<1x16x4xf32>, i32 -> vector<1x16x4xf32>
    %cst_35 = arith.constant 0.000000e+00 : f32
    %87 = vector.shape_cast %38 : vector<1x16x1xi1> to vector<1x16x1xi1>
    %88 = vector.broadcast %87 : vector<1x16x1xi1> to vector<1x16x4xi1>
    %89 = vector.broadcast %cst_35 : f32 to vector<1x16x4xf32>
    %90 = arith.select %88, %86, %89 : vector<1x16x4xi1>, vector<1x16x4xf32>
    %91 = arith.truncf %90 : vector<1x16x4xf32> to vector<1x16x4xbf16>
    %92 = tpu.concatenate %84, %85, %91 in 2 : vector<1x16x4xbf16>, vector<1x16x4xbf16>, vector<1x16x4xbf16> -> vector<1x16x12xbf16>
    %c1 = arith.constant 1 : index
    %c0_36 = arith.constant 0 : index
    %c0_37 = arith.constant 0 : index
    %93 = vector.load %arg6[%c1, %c0_36, %c0_37] : memref<3x12x4xbf16, #tpu.memory_space<vmem>>, vector<1x12x4xbf16>
    %94 = vector.shape_cast %93 : vector<1x12x4xbf16> to vector<12x4xbf16>
    %95 = vector.shape_cast %92 : vector<1x16x12xbf16> to vector<16x12xbf16>
    %cst_38 = arith.constant dense<0.000000e+00> : vector<16x4xf32>
    %96 = tpu.matmul %95, %94, %cst_38 {dimension_numbers = #tpu.dot_dimension_numbers<[1], [0], [0], [1], [0, 0, 1, 1], [], []>} : vector<16x12xbf16>, vector<12x4xbf16>, vector<16x4xf32> -> vector<16x4xf32>
    %97 = vector.shape_cast %96 : vector<16x4xf32> to vector<1x16x4xf32>
    %c1_39 = arith.constant 1 : index
    %c0_40 = arith.constant 0 : index
    %c0_41 = arith.constant 0 : index
    %98 = vector.load %arg7[%c1_39, %c0_40, %c0_41] : memref<3x1x4xf32, #tpu.memory_space<vmem>>, vector<1x1x4xf32>
    %99 = vector.shape_cast %98 : vector<1x1x4xf32> to vector<1x4xf32>
    %100 = vector.shape_cast %99 : vector<1x4xf32> to vector<1x1x4xf32>
    %101 = vector.broadcast %100 : vector<1x1x4xf32> to vector<1x16x4xf32>
    %102 = arith.addf %97, %101 : vector<1x16x4xf32>
    %cst_42 = arith.constant 0.000000e+00 : f32
    %103 = vector.broadcast %cst_42 : f32 to vector<1x16x4xf32>
    %104 = arith.maximumf %102, %103 : vector<1x16x4xf32>
    %c1_43 = arith.constant 1 : index
    %c0_44 = arith.constant 0 : index
    %c0_45 = arith.constant 0 : index
    %105 = vector.load %arg8[%c1_43, %c0_44, %c0_45] : memref<3x1x4xf32, #tpu.memory_space<vmem>>, vector<1x1x4xf32>
    %106 = vector.shape_cast %105 : vector<1x1x4xf32> to vector<1x4xf32>
    %107 = vector.shape_cast %106 : vector<1x4xf32> to vector<1x1x4xf32>
    %108 = vector.broadcast %107 : vector<1x1x4xf32> to vector<1x16x4xf32>
    %109 = arith.mulf %104, %108 : vector<1x16x4xf32>
    %c1_46 = arith.constant 1 : index
    %c0_47 = arith.constant 0 : index
    %c0_48 = arith.constant 0 : index
    %110 = vector.load %arg9[%c1_46, %c0_47, %c0_48] : memref<3x1x4xf32, #tpu.memory_space<vmem>>, vector<1x1x4xf32>
    %111 = vector.shape_cast %110 : vector<1x1x4xf32> to vector<1x4xf32>
    %112 = vector.shape_cast %111 : vector<1x4xf32> to vector<1x1x4xf32>
    %113 = vector.broadcast %112 : vector<1x1x4xf32> to vector<1x16x4xf32>
    %114 = arith.addf %109, %113 : vector<1x16x4xf32>
    %115 = arith.truncf %114 : vector<1x16x4xf32> to vector<1x16x4xbf16>
    %116 = vector.extract_strided_slice %19 {offsets = [0, 0, 8], sizes = [1, 16, 4], strides = [1, 1, 1]} : vector<1x16x16xf32> to vector<1x16x4xf32>
    %117 = arith.addf %114, %116 : vector<1x16x4xf32>
    %c2_i32_49 = arith.constant 2 : i32
    %118 = tpu.dynamic_rotate %117 by %c2_i32_49 dim 1 : vector<1x16x4xf32>, i32 -> vector<1x16x4xf32>
    %cst_50 = arith.constant 0.000000e+00 : f32
    %119 = vector.shape_cast %29 : vector<1x16x1xi1> to vector<1x16x1xi1>
    %120 = vector.broadcast %119 : vector<1x16x1xi1> to vector<1x16x4xi1>
    %121 = vector.broadcast %cst_50 : f32 to vector<1x16x4xf32>
    %122 = arith.select %120, %118, %121 : vector<1x16x4xi1>, vector<1x16x4xf32>
    %123 = arith.truncf %122 : vector<1x16x4xf32> to vector<1x16x4xbf16>
    %124 = arith.truncf %117 : vector<1x16x4xf32> to vector<1x16x4xbf16>
    %c14_i32_51 = arith.constant 14 : i32
    %125 = tpu.dynamic_rotate %117 by %c14_i32_51 dim 1 : vector<1x16x4xf32>, i32 -> vector<1x16x4xf32>
    %cst_52 = arith.constant 0.000000e+00 : f32
    %126 = vector.shape_cast %38 : vector<1x16x1xi1> to vector<1x16x1xi1>
    %127 = vector.broadcast %126 : vector<1x16x1xi1> to vector<1x16x4xi1>
    %128 = vector.broadcast %cst_52 : f32 to vector<1x16x4xf32>
    %129 = arith.select %127, %125, %128 : vector<1x16x4xi1>, vector<1x16x4xf32>
    %130 = arith.truncf %129 : vector<1x16x4xf32> to vector<1x16x4xbf16>
    %131 = tpu.concatenate %123, %124, %130 in 2 : vector<1x16x4xbf16>, vector<1x16x4xbf16>, vector<1x16x4xbf16> -> vector<1x16x12xbf16>
    %c2 = arith.constant 2 : index
    %c0_53 = arith.constant 0 : index
    %c0_54 = arith.constant 0 : index
    %132 = vector.load %arg6[%c2, %c0_53, %c0_54] : memref<3x12x4xbf16, #tpu.memory_space<vmem>>, vector<1x12x4xbf16>
    %133 = vector.shape_cast %132 : vector<1x12x4xbf16> to vector<12x4xbf16>
    %134 = vector.shape_cast %131 : vector<1x16x12xbf16> to vector<16x12xbf16>
    %cst_55 = arith.constant dense<0.000000e+00> : vector<16x4xf32>
    %135 = tpu.matmul %134, %133, %cst_55 {dimension_numbers = #tpu.dot_dimension_numbers<[1], [0], [0], [1], [0, 0, 1, 1], [], []>} : vector<16x12xbf16>, vector<12x4xbf16>, vector<16x4xf32> -> vector<16x4xf32>
    %136 = vector.shape_cast %135 : vector<16x4xf32> to vector<1x16x4xf32>
    %c2_56 = arith.constant 2 : index
    %c0_57 = arith.constant 0 : index
    %c0_58 = arith.constant 0 : index
    %137 = vector.load %arg7[%c2_56, %c0_57, %c0_58] : memref<3x1x4xf32, #tpu.memory_space<vmem>>, vector<1x1x4xf32>
    %138 = vector.shape_cast %137 : vector<1x1x4xf32> to vector<1x4xf32>
    %139 = vector.shape_cast %138 : vector<1x4xf32> to vector<1x1x4xf32>
    %140 = vector.broadcast %139 : vector<1x1x4xf32> to vector<1x16x4xf32>
    %141 = arith.addf %136, %140 : vector<1x16x4xf32>
    %cst_59 = arith.constant 0.000000e+00 : f32
    %142 = vector.broadcast %cst_59 : f32 to vector<1x16x4xf32>
    %143 = arith.maximumf %141, %142 : vector<1x16x4xf32>
    %c2_60 = arith.constant 2 : index
    %c0_61 = arith.constant 0 : index
    %c0_62 = arith.constant 0 : index
    %144 = vector.load %arg8[%c2_60, %c0_61, %c0_62] : memref<3x1x4xf32, #tpu.memory_space<vmem>>, vector<1x1x4xf32>
    %145 = vector.shape_cast %144 : vector<1x1x4xf32> to vector<1x4xf32>
    %146 = vector.shape_cast %145 : vector<1x4xf32> to vector<1x1x4xf32>
    %147 = vector.broadcast %146 : vector<1x1x4xf32> to vector<1x16x4xf32>
    %148 = arith.mulf %143, %147 : vector<1x16x4xf32>
    %c2_63 = arith.constant 2 : index
    %c0_64 = arith.constant 0 : index
    %c0_65 = arith.constant 0 : index
    %149 = vector.load %arg9[%c2_63, %c0_64, %c0_65] : memref<3x1x4xf32, #tpu.memory_space<vmem>>, vector<1x1x4xf32>
    %150 = vector.shape_cast %149 : vector<1x1x4xf32> to vector<1x4xf32>
    %151 = vector.shape_cast %150 : vector<1x4xf32> to vector<1x1x4xf32>
    %152 = vector.broadcast %151 : vector<1x1x4xf32> to vector<1x16x4xf32>
    %153 = arith.addf %148, %152 : vector<1x16x4xf32>
    %154 = arith.truncf %153 : vector<1x16x4xf32> to vector<1x16x4xbf16>
    %155 = vector.extract_strided_slice %19 {offsets = [0, 0, 12], sizes = [1, 16, 4], strides = [1, 1, 1]} : vector<1x16x16xf32> to vector<1x16x4xf32>
    %156 = arith.truncf %155 : vector<1x16x4xf32> to vector<1x16x4xbf16>
    %157 = tpu.concatenate %76, %115, %154, %156 in 2 : vector<1x16x4xbf16>, vector<1x16x4xbf16>, vector<1x16x4xbf16>, vector<1x16x4xbf16> -> vector<1x16x16xbf16>
    %c0_66 = arith.constant 0 : index
    %c0_67 = arith.constant 0 : index
    %158 = vector.load %arg10[%c0_66, %c0_67] : memref<16x16xbf16, #tpu.memory_space<vmem>>, vector<16x16xbf16>
    %159 = vector.shape_cast %157 : vector<1x16x16xbf16> to vector<16x16xbf16>
    %cst_68 = arith.constant dense<0.000000e+00> : vector<16x16xf32>
    %160 = tpu.matmul %159, %158, %cst_68 {dimension_numbers = #tpu.dot_dimension_numbers<[1], [0], [0], [1], [0, 0, 1, 1], [], []>} : vector<16x16xbf16>, vector<16x16xbf16>, vector<16x16xf32> -> vector<16x16xf32>
    %161 = vector.shape_cast %160 : vector<16x16xf32> to vector<1x16x16xf32>
    %c0_69 = arith.constant 0 : index
    %c0_70 = arith.constant 0 : index
    %162 = vector.load %arg11[%c0_69, %c0_70] : memref<1x16xf32, #tpu.memory_space<vmem>>, vector<1x16xf32>
    %163 = vector.shape_cast %162 : vector<1x16xf32> to vector<1x1x16xf32>
    %164 = vector.broadcast %163 : vector<1x1x16xf32> to vector<1x16x16xf32>
    %165 = arith.addf %161, %164 : vector<1x16x16xf32>
    %cst_71 = arith.constant 0.000000e+00 : f32
    %166 = vector.broadcast %cst_71 : f32 to vector<1x16x16xf32>
    %167 = arith.maximumf %165, %166 : vector<1x16x16xf32>
    %c0_72 = arith.constant 0 : index
    %c0_73 = arith.constant 0 : index
    %168 = vector.load %arg12[%c0_72, %c0_73] : memref<1x16xf32, #tpu.memory_space<vmem>>, vector<1x16xf32>
    %169 = vector.shape_cast %168 : vector<1x16xf32> to vector<1x1x16xf32>
    %170 = vector.broadcast %169 : vector<1x1x16xf32> to vector<1x16x16xf32>
    %171 = arith.mulf %167, %170 : vector<1x16x16xf32>
    %c0_74 = arith.constant 0 : index
    %c0_75 = arith.constant 0 : index
    %172 = vector.load %arg13[%c0_74, %c0_75] : memref<1x16xf32, #tpu.memory_space<vmem>>, vector<1x16xf32>
    %173 = vector.shape_cast %172 : vector<1x16xf32> to vector<1x1x16xf32>
    %174 = vector.broadcast %173 : vector<1x1x16xf32> to vector<1x16x16xf32>
    %175 = arith.addf %171, %174 : vector<1x16x16xf32>
    %cst_76 = arith.constant dense<0.000000e+00> : vector<1x16xf32>
    %176 = vector.multi_reduction <add>, %175, %cst_76 [1] : vector<1x16x16xf32> to vector<1x16xf32>
    %177 = vector.shape_cast %176 : vector<1x16xf32> to vector<1x1x16xf32>
    %cst_77 = arith.constant 1.600000e+01 : f32
    %178 = vector.broadcast %cst_77 : f32 to vector<1x1x16xf32>
    %179 = arith.divf %177, %178 : vector<1x1x16xf32>
    %180 = arith.truncf %179 : vector<1x1x16xf32> to vector<1x1x16xbf16>
    %c0_78 = arith.constant 0 : index
    %c0_79 = arith.constant 0 : index
    %181 = vector.load %arg14[%c0_78, %c0_79] : memref<16x32xbf16, #tpu.memory_space<vmem>>, vector<16x32xbf16>
    %182 = vector.shape_cast %180 : vector<1x1x16xbf16> to vector<1x16xbf16>
    %cst_80 = arith.constant dense<0.000000e+00> : vector<1x32xf32>
    %183 = tpu.matmul %182, %181, %cst_80 {dimension_numbers = #tpu.dot_dimension_numbers<[1], [0], [0], [1], [0, 0, 1, 1], [], []>} : vector<1x16xbf16>, vector<16x32xbf16>, vector<1x32xf32> -> vector<1x32xf32>
    %184 = vector.shape_cast %183 : vector<1x32xf32> to vector<1x1x32xf32>
    %c0_81 = arith.constant 0 : index
    %c0_82 = arith.constant 0 : index
    %185 = vector.load %arg15[%c0_81, %c0_82] : memref<1x32xf32, #tpu.memory_space<vmem>>, vector<1x32xf32>
    %186 = vector.shape_cast %185 : vector<1x32xf32> to vector<1x1x32xf32>
    %187 = arith.addf %184, %186 : vector<1x1x32xf32>
    %cst_83 = arith.constant 0.000000e+00 : f32
    %188 = vector.broadcast %cst_83 : f32 to vector<1x1x32xf32>
    %189 = arith.maximumf %187, %188 : vector<1x1x32xf32>
    %190 = arith.truncf %189 : vector<1x1x32xf32> to vector<1x1x32xbf16>
    %c0_84 = arith.constant 0 : index
    %c0_85 = arith.constant 0 : index
    %191 = vector.load %arg16[%c0_84, %c0_85] : memref<32x16xbf16, #tpu.memory_space<vmem>>, vector<32x16xbf16>
    %192 = vector.shape_cast %190 : vector<1x1x32xbf16> to vector<1x32xbf16>
    %cst_86 = arith.constant dense<0.000000e+00> : vector<1x16xf32>
    %193 = tpu.matmul %192, %191, %cst_86 {dimension_numbers = #tpu.dot_dimension_numbers<[1], [0], [0], [1], [0, 0, 1, 1], [], []>} : vector<1x32xbf16>, vector<32x16xbf16>, vector<1x16xf32> -> vector<1x16xf32>
    %194 = vector.shape_cast %193 : vector<1x16xf32> to vector<1x1x16xf32>
    %c0_87 = arith.constant 0 : index
    %c0_88 = arith.constant 0 : index
    %195 = vector.load %arg17[%c0_87, %c0_88] : memref<1x16xf32, #tpu.memory_space<vmem>>, vector<1x16xf32>
    %196 = vector.shape_cast %195 : vector<1x16xf32> to vector<1x1x16xf32>
    %197 = arith.addf %194, %196 : vector<1x1x16xf32>
    %198 = arith.negf %197 : vector<1x1x16xf32>
    %199 = math.exp %198 : vector<1x1x16xf32>
    %cst_89 = arith.constant 1.000000e+00 : f32
    %200 = vector.broadcast %cst_89 : f32 to vector<1x1x16xf32>
    %201 = arith.addf %200, %199 : vector<1x1x16xf32>
    %202 = arith.divf %200, %201 : vector<1x1x16xf32>
    %203 = vector.broadcast %202 : vector<1x1x16xf32> to vector<1x16x16xf32>
    %204 = arith.mulf %175, %203 : vector<1x16x16xf32>
    %205 = arith.addf %204, %0 : vector<1x16x16xf32>
    %c0_90 = arith.constant 0 : index
    %c0_91 = arith.constant 0 : index
    %c0_92 = arith.constant 0 : index
    %206 = vector.load %arg18[%c0_90, %c0_91, %c0_92] : memref<1x16x16xf32, #tpu.memory_space<vmem>>, vector<1x16x16xf32>
    tpu.vector_store %arg18[%c0_90, %c0_91, %c0_92], %205 {strides = array<i32>} : memref<1x16x16xf32, #tpu.memory_space<vmem>>, vector<1x16x16xf32>,
    return
  }
  func.func @transform_0(%arg0: i32) -> (i32, i32, i32) {
    %c0_i32 = arith.constant 0 : i32
    %c0_i32_0 = arith.constant 0 : i32
    %c0_i32_1 = arith.constant 0 : i32
    return %arg0, %c0_i32, %c0_i32_0 : i32, i32, i32
  }
  func.func @transform_1(%arg0: i32) -> (i32, i32) {
    %c0_i32 = arith.constant 0 : i32
    %c0_i32_0 = arith.constant 0 : i32
    %c0_i32_1 = arith.constant 0 : i32
    return %c0_i32, %c0_i32_0 : i32, i32
  }
  func.func @transform_2(%arg0: i32) -> (i32, i32) {
    %c0_i32 = arith.constant 0 : i32
    %c0_i32_0 = arith.constant 0 : i32
    %c0_i32_1 = arith.constant 0 : i32
    return %c0_i32, %c0_i32_0 : i32, i32
  }
  func.func @transform_3(%arg0: i32) -> (i32, i32) {
    %c0_i32 = arith.constant 0 : i32
    %c0_i32_0 = arith.constant 0 : i32
    %c0_i32_1 = arith.constant 0 : i32
    return %c0_i32, %c0_i32_0 : i32, i32
  }
  func.func @transform_4(%arg0: i32) -> (i32, i32) {
    %c0_i32 = arith.constant 0 : i32
    %c0_i32_0 = arith.constant 0 : i32
    %c0_i32_1 = arith.constant 0 : i32
    return %c0_i32, %c0_i32_0 : i32, i32
  }
  func.func @transform_5(%arg0: i32) -> (i32, i32, i32) {
    %c0_i32 = arith.constant 0 : i32
    %c0_i32_0 = arith.constant 0 : i32
    %c0_i32_1 = arith.constant 0 : i32
    %c0_i32_2 = arith.constant 0 : i32
    return %c0_i32, %c0_i32_0, %c0_i32_1 : i32, i32, i32
  }
  func.func @transform_6(%arg0: i32) -> (i32, i32, i32) {
    %c0_i32 = arith.constant 0 : i32
    %c0_i32_0 = arith.constant 0 : i32
    %c0_i32_1 = arith.constant 0 : i32
    %c0_i32_2 = arith.constant 0 : i32
    return %c0_i32, %c0_i32_0, %c0_i32_1 : i32, i32, i32
  }
  func.func @transform_7(%arg0: i32) -> (i32, i32, i32) {
    %c0_i32 = arith.constant 0 : i32
    %c0_i32_0 = arith.constant 0 : i32
    %c0_i32_1 = arith.constant 0 : i32
    %c0_i32_2 = arith.constant 0 : i32
    return %c0_i32, %c0_i32_0, %c0_i32_1 : i32, i32, i32
  }
  func.func @transform_8(%arg0: i32) -> (i32, i32, i32) {
    %c0_i32 = arith.constant 0 : i32
    %c0_i32_0 = arith.constant 0 : i32
    %c0_i32_1 = arith.constant 0 : i32
    %c0_i32_2 = arith.constant 0 : i32
    return %c0_i32, %c0_i32_0, %c0_i32_1 : i32, i32, i32
  }
  func.func @transform_9(%arg0: i32) -> (i32, i32) {
    %c0_i32 = arith.constant 0 : i32
    %c0_i32_0 = arith.constant 0 : i32
    %c0_i32_1 = arith.constant 0 : i32
    return %c0_i32, %c0_i32_0 : i32, i32
  }
  func.func @transform_10(%arg0: i32) -> (i32, i32) {
    %c0_i32 = arith.constant 0 : i32
    %c0_i32_0 = arith.constant 0 : i32
    %c0_i32_1 = arith.constant 0 : i32
    return %c0_i32, %c0_i32_0 : i32, i32
  }
  func.func @transform_11(%arg0: i32) -> (i32, i32) {
    %c0_i32 = arith.constant 0 : i32
    %c0_i32_0 = arith.constant 0 : i32
    %c0_i32_1 = arith.constant 0 : i32
    return %c0_i32, %c0_i32_0 : i32, i32
  }
  func.func @transform_12(%arg0: i32) -> (i32, i32) {
    %c0_i32 = arith.constant 0 : i32
    %c0_i32_0 = arith.constant 0 : i32
    %c0_i32_1 = arith.constant 0 : i32
    return %c0_i32, %c0_i32_0 : i32, i32
  }
  func.func @transform_13(%arg0: i32) -> (i32, i32) {
    %c0_i32 = arith.constant 0 : i32
    %c0_i32_0 = arith.constant 0 : i32
    %c0_i32_1 = arith.constant 0 : i32
    return %c0_i32, %c0_i32_0 : i32, i32
  }
  func.func @transform_14(%arg0: i32) -> (i32, i32) {
    %c0_i32 = arith.constant 0 : i32
    %c0_i32_0 = arith.constant 0 : i32
    %c0_i32_1 = arith.constant 0 : i32
    return %c0_i32, %c0_i32_0 : i32, i32
  }
  func.func @transform_15(%arg0: i32) -> (i32, i32) {
    %c0_i32 = arith.constant 0 : i32
    %c0_i32_0 = arith.constant 0 : i32
    %c0_i32_1 = arith.constant 0 : i32
    return %c0_i32, %c0_i32_0 : i32, i32
  }
  func.func @transform_16(%arg0: i32) -> (i32, i32) {
    %c0_i32 = arith.constant 0 : i32
    %c0_i32_0 = arith.constant 0 : i32
    %c0_i32_1 = arith.constant 0 : i32
    return %c0_i32, %c0_i32_0 : i32, i32
  }
  func.func @transform_17(%arg0: i32) -> (i32, i32, i32) {
    %c0_i32 = arith.constant 0 : i32
    %c0_i32_0 = arith.constant 0 : i32
    %c0_i32_1 = arith.constant 0 : i32
    return %arg0, %c0_i32, %c0_i32_0 : i32, i32, i32
  }
}

module attributes {stable_mosaic.version = 11 : i64} {
  func.func @kernel(%arg0: i32, %arg1: memref<1x16x16xf32, #tpu.memory_space<vmem>>, %arg2: memref<16x16xbf16, #tpu.memory_space<vmem>>, %arg3: memref<1x16xf32, #tpu.memory_space<vmem>>, %arg4: memref<1x16xf32, #tpu.memory_space<vmem>>, %arg5: memref<1x16xf32, #tpu.memory_space<vmem>>, %arg6: memref<3x12x4xbf16, #tpu.memory_space<vmem>>, %arg7: memref<3x1x4xf32, #tpu.memory_space<vmem>>, %arg8: memref<3x1x4xf32, #tpu.memory_space<vmem>>, %arg9: memref<3x1x4xf32, #tpu.memory_space<vmem>>, %arg10: memref<16x16xbf16, #tpu.memory_space<vmem>>, %arg11: memref<1x16xf32, #tpu.memory_space<vmem>>, %arg12: memref<1x16xf32, #tpu.memory_space<vmem>>, %arg13: memref<1x16xf32, #tpu.memory_space<vmem>>, %arg14: memref<16x32xbf16, #tpu.memory_space<vmem>>, %arg15: memref<1x32xf32, #tpu.memory_space<vmem>>, %arg16: memref<32x16xbf16, #tpu.memory_space<vmem>>, %arg17: memref<1x16xf32, #tpu.memory_space<vmem>>, %arg18: memref<1x16x16xf32, #tpu.memory_space<vmem>>) attributes {dimension_semantics = [#tpu.dimension_semantics<parallel>], iteration_bounds = array<i64: 2>, scalar_prefetch = 0 : i64, scratch_operands = 0 : i64, tpu.core_type = #tpu.core_type<tc>, window_params = [{transform_indices = @transform_0, window_bounds = array<i64: 1, 16, 16>}, {pipeline_mode = #tpu.pipeline_mode<synchronous>, transform_indices = @transform_1, window_bounds = array<i64: 16, 16>}, {pipeline_mode = #tpu.pipeline_mode<synchronous>, transform_indices = @transform_2, window_bounds = array<i64: 1, 16>}, {pipeline_mode = #tpu.pipeline_mode<synchronous>, transform_indices = @transform_3, window_bounds = array<i64: 1, 16>}, {pipeline_mode = #tpu.pipeline_mode<synchronous>, transform_indices = @transform_4, window_bounds = array<i64: 1, 16>}, {pipeline_mode = #tpu.pipeline_mode<synchronous>, transform_indices = @transform_5, window_bounds = array<i64: 3, 12, 4>}, {pipeline_mode = #tpu.pipeline_mode<synchronous>, transform_indices = @transform_6, window_bounds = array<i64: 3, 1, 4>}, {pipeline_mode = #tpu.pipeline_mode<synchronous>, transform_indices = @transform_7, window_bounds = array<i64: 3, 1, 4>}, {pipeline_mode = #tpu.pipeline_mode<synchronous>, transform_indices = @transform_8, window_bounds = array<i64: 3, 1, 4>}, {pipeline_mode = #tpu.pipeline_mode<synchronous>, transform_indices = @transform_9, window_bounds = array<i64: 16, 16>}, {pipeline_mode = #tpu.pipeline_mode<synchronous>, transform_indices = @transform_10, window_bounds = array<i64: 1, 16>}, {pipeline_mode = #tpu.pipeline_mode<synchronous>, transform_indices = @transform_11, window_bounds = array<i64: 1, 16>}, {pipeline_mode = #tpu.pipeline_mode<synchronous>, transform_indices = @transform_12, window_bounds = array<i64: 1, 16>}, {pipeline_mode = #tpu.pipeline_mode<synchronous>, transform_indices = @transform_13, window_bounds = array<i64: 16, 32>}, {pipeline_mode = #tpu.pipeline_mode<synchronous>, transform_indices = @transform_14, window_bounds = array<i64: 1, 32>}, {pipeline_mode = #tpu.pipeline_mode<synchronous>, transform_indices = @transform_15, window_bounds = array<i64: 32, 16>}, {pipeline_mode = #tpu.pipeline_mode<synchronous>, transform_indices = @transform_16, window_bounds = array<i64: 1, 16>}, {transform_indices = @transform_17, window_bounds = array<i64: 1, 16, 16>}]} {
    %c0 = arith.constant 0 : index
    %c0_0 = arith.constant 0 : index
    %c0_1 = arith.constant 0 : index
    %0 = vector.load %arg1[%c0, %c0_0, %c0_1] : memref<1x16x16xf32, #tpu.memory_space<vmem>>, vector<1x16x16xf32>
    %1 = arith.truncf %0 : vector<1x16x16xf32> to vector<1x16x16xbf16>
    %c0_2 = arith.constant 0 : index
    %c0_3 = arith.constant 0 : index
    %2 = vector.load %arg2[%c0_2, %c0_3] : memref<16x16xbf16, #tpu.memory_space<vmem>>, vector<16x16xbf16>
    %3 = vector.shape_cast %1 : vector<1x16x16xbf16> to vector<16x16xbf16>
    %cst = arith.constant dense<0.000000e+00> : vector<16x16xf32>
    %4 = tpu.matmul %3, %2, %cst {dimension_numbers = #tpu.dot_dimension_numbers<[1], [0], [0], [1], [0, 0, 1, 1], [], []>} : vector<16x16xbf16>, vector<16x16xbf16>, vector<16x16xf32> -> vector<16x16xf32>
    %5 = vector.shape_cast %4 : vector<16x16xf32> to vector<1x16x16xf32>
    %c0_4 = arith.constant 0 : index
    %c0_5 = arith.constant 0 : index
    %6 = vector.load %arg3[%c0_4, %c0_5] : memref<1x16xf32, #tpu.memory_space<vmem>>, vector<1x16xf32>
    %7 = vector.shape_cast %6 : vector<1x16xf32> to vector<1x1x16xf32>
    %8 = vector.broadcast %7 : vector<1x1x16xf32> to vector<1x16x16xf32>
    %9 = arith.addf %5, %8 : vector<1x16x16xf32>
    %cst_6 = arith.constant 0.000000e+00 : f32
    %10 = vector.broadcast %cst_6 : f32 to vector<1x16x16xf32>
    %11 = arith.maximumf %9, %10 : vector<1x16x16xf32>
    %c0_7 = arith.constant 0 : index
    %c0_8 = arith.constant 0 : index
    %12 = vector.load %arg4[%c0_7, %c0_8] : memref<1x16xf32, #tpu.memory_space<vmem>>, vector<1x16xf32>
    %13 = vector.shape_cast %12 : vector<1x16xf32> to vector<1x1x16xf32>
    %14 = vector.broadcast %13 : vector<1x1x16xf32> to vector<1x16x16xf32>
    %15 = arith.mulf %11, %14 : vector<1x16x16xf32>
    %c0_9 = arith.constant 0 : index
    %c0_10 = arith.constant 0 : index
    %16 = vector.load %arg5[%c0_9, %c0_10] : memref<1x16xf32, #tpu.memory_space<vmem>>, vector<1x16xf32>
    %17 = vector.shape_cast %16 : vector<1x16xf32> to vector<1x1x16xf32>
    %18 = vector.broadcast %17 : vector<1x1x16xf32> to vector<1x16x16xf32>
    %19 = arith.addf %15, %18 : vector<1x16x16xf32>
    %20 = tpu.iota {dimensions = array<i32: 1>} : vector<1x16x1xi32>
    %c-2_i32 = arith.constant -2 : i32
    %21 = vector.broadcast %c-2_i32 : i32 to vector<1x16x1xi32>
    %22 = arith.addi %20, %21 : vector<1x16x1xi32>
    %c0_i32 = arith.constant 0 : i32
    %23 = vector.broadcast %c0_i32 : i32 to vector<1x16x1xi32>
    %24 = arith.cmpi sge, %22, %23 : vector<1x16x1xi32>
    %c-2_i32_11 = arith.constant -2 : i32
    %25 = vector.broadcast %c-2_i32_11 : i32 to vector<1x16x1xi32>
    %26 = arith.addi %20, %25 : vector<1x16x1xi32>
    %c16_i32 = arith.constant 16 : i32
    %27 = vector.broadcast %c16_i32 : i32 to vector<1x16x1xi32>
    %28 = arith.cmpi slt, %26, %27 : vector<1x16x1xi32>
    %29 = arith.andi %24, %28 : vector<1x16x1xi1>
    %c2_i32 = arith.constant 2 : i32
    %30 = vector.broadcast %c2_i32 : i32 to vector<1x16x1xi32>
    %31 = arith.addi %20, %30 : vector<1x16x1xi32>
    %c0_i32_12 = arith.constant 0 : i32
    %32 = vector.broadcast %c0_i32_12 : i32 to vector<1x16x1xi32>
    %33 = arith.cmpi sge, %31, %32 : vector<1x16x1xi32>
    %c2_i32_13 = arith.constant 2 : i32
    %34 = vector.broadcast %c2_i32_13 : i32 to vector<1x16x1xi32>
    %35 = arith.addi %20, %34 : vector<1x16x1xi32>
    %c16_i32_14 = arith.constant 16 : i32
    %36 = vector.broadcast %c16_i32_14 : i32 to vector<1x16x1xi32>
    %37 = arith.cmpi slt, %35, %36 : vector<1x16x1xi32>
    %38 = arith.andi %33, %37 : vector<1x16x1xi1>
    %39 = vector.extract_strided_slice %19 {offsets = [0, 0, 0], sizes = [1, 16, 4], strides = [1, 1, 1]} : vector<1x16x16xf32> to vector<1x16x4xf32>
    %c2_i32_15 = arith.constant 2 : i32
    %40 = tpu.dynamic_rotate %39 by %c2_i32_15 dim 1 : vector<1x16x4xf32>, i32 -> vector<1x16x4xf32>
    %cst_16 = arith.constant 0.000000e+00 : f32
    %41 = vector.shape_cast %29 : vector<1x16x1xi1> to vector<1x16x1xi1>
    %42 = vector.broadcast %41 : vector<1x16x1xi1> to vector<1x16x4xi1>
    %43 = vector.broadcast %cst_16 : f32 to vector<1x16x4xf32>
    %44 = arith.select %42, %40, %43 : vector<1x16x4xi1>, vector<1x16x4xf32>
    %45 = arith.truncf %44 : vector<1x16x4xf32> to vector<1x16x4xbf16>
    %46 = arith.truncf %39 : vector<1x16x4xf32> to vector<1x16x4xbf16>
    %c14_i32 = arith.constant 14 : i32
    %47 = tpu.dynamic_rotate %39 by %c14_i32 dim 1 : vector<1x16x4xf32>, i32 -> vector<1x16x4xf32>
    %cst_17 = arith.constant 0.000000e+00 : f32
    %48 = vector.shape_cast %38 : vector<1x16x1xi1> to vector<1x16x1xi1>
    %49 = vector.broadcast %48 : vector<1x16x1xi1> to vector<1x16x4xi1>
    %50 = vector.broadcast %cst_17 : f32 to vector<1x16x4xf32>
    %51 = arith.select %49, %47, %50 : vector<1x16x4xi1>, vector<1x16x4xf32>
    %52 = arith.truncf %51 : vector<1x16x4xf32> to vector<1x16x4xbf16>
    %53 = tpu.concatenate %45, %46, %52 in 2 : vector<1x16x4xbf16>, vector<1x16x4xbf16>, vector<1x16x4xbf16> -> vector<1x16x12xbf16>
    %c0_18 = arith.constant 0 : index
    %c0_19 = arith.constant 0 : index
    %c0_20 = arith.constant 0 : index
    %54 = vector.load %arg6[%c0_18, %c0_19, %c0_20] : memref<3x12x4xbf16, #tpu.memory_space<vmem>>, vector<1x12x4xbf16>
    %55 = vector.shape_cast %54 : vector<1x12x4xbf16> to vector<12x4xbf16>
    %56 = vector.shape_cast %53 : vector<1x16x12xbf16> to vector<16x12xbf16>
    %cst_21 = arith.constant dense<0.000000e+00> : vector<16x4xf32>
    %57 = tpu.matmul %56, %55, %cst_21 {dimension_numbers = #tpu.dot_dimension_numbers<[1], [0], [0], [1], [0, 0, 1, 1], [], []>} : vector<16x12xbf16>, vector<12x4xbf16>, vector<16x4xf32> -> vector<16x4xf32>
    %58 = vector.shape_cast %57 : vector<16x4xf32> to vector<1x16x4xf32>
    %c0_22 = arith.constant 0 : index
    %c0_23 = arith.constant 0 : index
    %c0_24 = arith.constant 0 : index
    %59 = vector.load %arg7[%c0_22, %c0_23, %c0_24] : memref<3x1x4xf32, #tpu.memory_space<vmem>>, vector<1x1x4xf32>
    %60 = vector.shape_cast %59 : vector<1x1x4xf32> to vector<1x4xf32>
    %61 = vector.shape_cast %60 : vector<1x4xf32> to vector<1x1x4xf32>
    %62 = vector.broadcast %61 : vector<1x1x4xf32> to vector<1x16x4xf32>
    %63 = arith.addf %58, %62 : vector<1x16x4xf32>
    %cst_25 = arith.constant 0.000000e+00 : f32
    %64 = vector.broadcast %cst_25 : f32 to vector<1x16x4xf32>
    %65 = arith.maximumf %63, %64 : vector<1x16x4xf32>
    %c0_26 = arith.constant 0 : index
    %c0_27 = arith.constant 0 : index
    %c0_28 = arith.constant 0 : index
    %66 = vector.load %arg8[%c0_26, %c0_27, %c0_28] : memref<3x1x4xf32, #tpu.memory_space<vmem>>, vector<1x1x4xf32>
    %67 = vector.shape_cast %66 : vector<1x1x4xf32> to vector<1x4xf32>
    %68 = vector.shape_cast %67 : vector<1x4xf32> to vector<1x1x4xf32>
    %69 = vector.broadcast %68 : vector<1x1x4xf32> to vector<1x16x4xf32>
    %70 = arith.mulf %65, %69 : vector<1x16x4xf32>
    %c0_29 = arith.constant 0 : index
    %c0_30 = arith.constant 0 : index
    %c0_31 = arith.constant 0 : index
    %71 = vector.load %arg9[%c0_29, %c0_30, %c0_31] : memref<3x1x4xf32, #tpu.memory_space<vmem>>, vector<1x1x4xf32>
    %72 = vector.shape_cast %71 : vector<1x1x4xf32> to vector<1x4xf32>
    %73 = vector.shape_cast %72 : vector<1x4xf32> to vector<1x1x4xf32>
    %74 = vector.broadcast %73 : vector<1x1x4xf32> to vector<1x16x4xf32>
    %75 = arith.addf %70, %74 : vector<1x16x4xf32>
    %76 = arith.truncf %75 : vector<1x16x4xf32> to vector<1x16x4xbf16>
    %77 = vector.extract_strided_slice %19 {offsets = [0, 0, 4], sizes = [1, 16, 4], strides = [1, 1, 1]} : vector<1x16x16xf32> to vector<1x16x4xf32>
    %78 = arith.addf %75, %77 : vector<1x16x4xf32>
    %c2_i32_32 = arith.constant 2 : i32
    %79 = tpu.dynamic_rotate %78 by %c2_i32_32 dim 1 : vector<1x16x4xf32>, i32 -> vector<1x16x4xf32>
    %cst_33 = arith.constant 0.000000e+00 : f32
    %80 = vector.shape_cast %29 : vector<1x16x1xi1> to vector<1x16x1xi1>
    %81 = vector.broadcast %80 : vector<1x16x1xi1> to vector<1x16x4xi1>
    %82 = vector.broadcast %cst_33 : f32 to vector<1x16x4xf32>
    %83 = arith.select %81, %79, %82 : vector<1x16x4xi1>, vector<1x16x4xf32>
    %84 = arith.truncf %83 : vector<1x16x4xf32> to vector<1x16x4xbf16>
    %85 = arith.truncf %78 : vector<1x16x4xf32> to vector<1x16x4xbf16>
    %c14_i32_34 = arith.constant 14 : i32
    %86 = tpu.dynamic_rotate %78 by %c14_i32_34 dim 1 : vector<1x16x4xf32>, i32 -> vector<1x16x4xf32>
    %cst_35 = arith.constant 0.000000e+00 : f32
    %87 = vector.shape_cast %38 : vector<1x16x1xi1> to vector<1x16x1xi1>
    %88 = vector.broadcast %87 : vector<1x16x1xi1> to vector<1x16x4xi1>
    %89 = vector.broadcast %cst_35 : f32 to vector<1x16x4xf32>
    %90 = arith.select %88, %86, %89 : vector<1x16x4xi1>, vector<1x16x4xf32>
    %91 = arith.truncf %90 : vector<1x16x4xf32> to vector<1x16x4xbf16>
    %92 = tpu.concatenate %84, %85, %91 in 2 : vector<1x16x4xbf16>, vector<1x16x4xbf16>, vector<1x16x4xbf16> -> vector<1x16x12xbf16>
    %c1 = arith.constant 1 : index
    %c0_36 = arith.constant 0 : index
    %c0_37 = arith.constant 0 : index
    %93 = vector.load %arg6[%c1, %c0_36, %c0_37] : memref<3x12x4xbf16, #tpu.memory_space<vmem>>, vector<1x12x4xbf16>
    %94 = vector.shape_cast %93 : vector<1x12x4xbf16> to vector<12x4xbf16>
    %95 = vector.shape_cast %92 : vector<1x16x12xbf16> to vector<16x12xbf16>
    %cst_38 = arith.constant dense<0.000000e+00> : vector<16x4xf32>
    %96 = tpu.matmul %95, %94, %cst_38 {dimension_numbers = #tpu.dot_dimension_numbers<[1], [0], [0], [1], [0, 0, 1, 1], [], []>} : vector<16x12xbf16>, vector<12x4xbf16>, vector<16x4xf32> -> vector<16x4xf32>
    %97 = vector.shape_cast %96 : vector<16x4xf32> to vector<1x16x4xf32>
    %c1_39 = arith.constant 1 : index
    %c0_40 = arith.constant 0 : index
    %c0_41 = arith.constant 0 : index
    %98 = vector.load %arg7[%c1_39, %c0_40, %c0_41] : memref<3x1x4xf32, #tpu.memory_space<vmem>>, vector<1x1x4xf32>
    %99 = vector.shape_cast %98 : vector<1x1x4xf32> to vector<1x4xf32>
    %100 = vector.shape_cast %99 : vector<1x4xf32> to vector<1x1x4xf32>
    %101 = vector.broadcast %100 : vector<1x1x4xf32> to vector<1x16x4xf32>
    %102 = arith.addf %97, %101 : vector<1x16x4xf32>
    %cst_42 = arith.constant 0.000000e+00 : f32
    %103 = vector.broadcast %cst_42 : f32 to vector<1x16x4xf32>
    %104 = arith.maximumf %102, %103 : vector<1x16x4xf32>
    %c1_43 = arith.constant 1 : index
    %c0_44 = arith.constant 0 : index
    %c0_45 = arith.constant 0 : index
    %105 = vector.load %arg8[%c1_43, %c0_44, %c0_45] : memref<3x1x4xf32, #tpu.memory_space<vmem>>, vector<1x1x4xf32>
    %106 = vector.shape_cast %105 : vector<1x1x4xf32> to vector<1x4xf32>
    %107 = vector.shape_cast %106 : vector<1x4xf32> to vector<1x1x4xf32>
    %108 = vector.broadcast %107 : vector<1x1x4xf32> to vector<1x16x4xf32>
    %109 = arith.mulf %104, %108 : vector<1x16x4xf32>
    %c1_46 = arith.constant 1 : index
    %c0_47 = arith.constant 0 : index
    %c0_48 = arith.constant 0 : index
    %110 = vector.load %arg9[%c1_46, %c0_47, %c0_48] : memref<3x1x4xf32, #tpu.memory_space<vmem>>, vector<1x1x4xf32>
    %111 = vector.shape_cast %110 : vector<1x1x4xf32> to vector<1x4xf32>
    %112 = vector.shape_cast %111 : vector<1x4xf32> to vector<1x1x4xf32>
    %113 = vector.broadcast %112 : vector<1x1x4xf32> to vector<1x16x4xf32>
    %114 = arith.addf %109, %113 : vector<1x16x4xf32>
    %115 = arith.truncf %114 : vector<1x16x4xf32> to vector<1x16x4xbf16>
    %116 = vector.extract_strided_slice %19 {offsets = [0, 0, 8], sizes = [1, 16, 4], strides = [1, 1, 1]} : vector<1x16x16xf32> to vector<1x16x4xf32>
    %117 = arith.addf %114, %116 : vector<1x16x4xf32>
    %c2_i32_49 = arith.constant 2 : i32
    %118 = tpu.dynamic_rotate %117 by %c2_i32_49 dim 1 : vector<1x16x4xf32>, i32 -> vector<1x16x4xf32>
    %cst_50 = arith.constant 0.000000e+00 : f32
    %119 = vector.shape_cast %29 : vector<1x16x1xi1> to vector<1x16x1xi1>
    %120 = vector.broadcast %119 : vector<1x16x1xi1> to vector<1x16x4xi1>
    %121 = vector.broadcast %cst_50 : f32 to vector<1x16x4xf32>
    %122 = arith.select %120, %118, %121 : vector<1x16x4xi1>, vector<1x16x4xf32>
    %123 = arith.truncf %122 : vector<1x16x4xf32> to vector<1x16x4xbf16>
    %124 = arith.truncf %117 : vector<1x16x4xf32> to vector<1x16x4xbf16>
    %c14_i32_51 = arith.constant 14 : i32
    %125 = tpu.dynamic_rotate %117 by %c14_i32_51 dim 1 : vector<1x16x4xf32>, i32 -> vector<1x16x4xf32>
    %cst_52 = arith.constant 0.000000e+00 : f32
    %126 = vector.shape_cast %38 : vector<1x16x1xi1> to vector<1x16x1xi1>
    %127 = vector.broadcast %126 : vector<1x16x1xi1> to vector<1x16x4xi1>
    %128 = vector.broadcast %cst_52 : f32 to vector<1x16x4xf32>
    %129 = arith.select %127, %125, %128 : vector<1x16x4xi1>, vector<1x16x4xf32>
    %130 = arith.truncf %129 : vector<1x16x4xf32> to vector<1x16x4xbf16>
    %131 = tpu.concatenate %123, %124, %130 in 2 : vector<1x16x4xbf16>, vector<1x16x4xbf16>, vector<1x16x4xbf16> -> vector<1x16x12xbf16>
    %c2 = arith.constant 2 : index
    %c0_53 = arith.constant 0 : index
    %c0_54 = arith.constant 0 : index
    %132 = vector.load %arg6[%c2, %c0_53, %c0_54] : memref<3x12x4xbf16, #tpu.memory_space<vmem>>, vector<1x12x4xbf16>
    %133 = vector.shape_cast %132 : vector<1x12x4xbf16> to vector<12x4xbf16>
    %134 = vector.shape_cast %131 : vector<1x16x12xbf16> to vector<16x12xbf16>
    %cst_55 = arith.constant dense<0.000000e+00> : vector<16x4xf32>
    %135 = tpu.matmul %134, %133, %cst_55 {dimension_numbers = #tpu.dot_dimension_numbers<[1], [0], [0], [1], [0, 0, 1, 1], [], []>} : vector<16x12xbf16>, vector<12x4xbf16>, vector<16x4xf32> -> vector<16x4xf32>
    %136 = vector.shape_cast %135 : vector<16x4xf32> to vector<1x16x4xf32>
    %c2_56 = arith.constant 2 : index
    %c0_57 = arith.constant 0 : index
    %c0_58 = arith.constant 0 : index
    %137 = vector.load %arg7[%c2_56, %c0_57, %c0_58] : memref<3x1x4xf32, #tpu.memory_space<vmem>>, vector<1x1x4xf32>
    %138 = vector.shape_cast %137 : vector<1x1x4xf32> to vector<1x4xf32>
    %139 = vector.shape_cast %138 : vector<1x4xf32> to vector<1x1x4xf32>
    %140 = vector.broadcast %139 : vector<1x1x4xf32> to vector<1x16x4xf32>
    %141 = arith.addf %136, %140 : vector<1x16x4xf32>
    %cst_59 = arith.constant 0.000000e+00 : f32
    %142 = vector.broadcast %cst_59 : f32 to vector<1x16x4xf32>
    %143 = arith.maximumf %141, %142 : vector<1x16x4xf32>
    %c2_60 = arith.constant 2 : index
    %c0_61 = arith.constant 0 : index
    %c0_62 = arith.constant 0 : index
    %144 = vector.load %arg8[%c2_60, %c0_61, %c0_62] : memref<3x1x4xf32, #tpu.memory_space<vmem>>, vector<1x1x4xf32>
    %145 = vector.shape_cast %144 : vector<1x1x4xf32> to vector<1x4xf32>
    %146 = vector.shape_cast %145 : vector<1x4xf32> to vector<1x1x4xf32>
    %147 = vector.broadcast %146 : vector<1x1x4xf32> to vector<1x16x4xf32>
    %148 = arith.mulf %143, %147 : vector<1x16x4xf32>
    %c2_63 = arith.constant 2 : index
    %c0_64 = arith.constant 0 : index
    %c0_65 = arith.constant 0 : index
    %149 = vector.load %arg9[%c2_63, %c0_64, %c0_65] : memref<3x1x4xf32, #tpu.memory_space<vmem>>, vector<1x1x4xf32>
    %150 = vector.shape_cast %149 : vector<1x1x4xf32> to vector<1x4xf32>
    %151 = vector.shape_cast %150 : vector<1x4xf32> to vector<1x1x4xf32>
    %152 = vector.broadcast %151 : vector<1x1x4xf32> to vector<1x16x4xf32>
    %153 = arith.addf %148, %152 : vector<1x16x4xf32>
    %154 = arith.truncf %153 : vector<1x16x4xf32> to vector<1x16x4xbf16>
    %155 = vector.extract_strided_slice %19 {offsets = [0, 0, 12], sizes = [1, 16, 4], strides = [1, 1, 1]} : vector<1x16x16xf32> to vector<1x16x4xf32>
    %156 = arith.truncf %155 : vector<1x16x4xf32> to vector<1x16x4xbf16>
    %157 = tpu.concatenate %76, %115, %154, %156 in 2 : vector<1x16x4xbf16>, vector<1x16x4xbf16>, vector<1x16x4xbf16>, vector<1x16x4xbf16> -> vector<1x16x16xbf16>
    %c0_66 = arith.constant 0 : index
    %c0_67 = arith.constant 0 : index
    %158 = vector.load %arg10[%c0_66, %c0_67] : memref<16x16xbf16, #tpu.memory_space<vmem>>, vector<16x16xbf16>
    %159 = vector.shape_cast %157 : vector<1x16x16xbf16> to vector<16x16xbf16>
    %cst_68 = arith.constant dense<0.000000e+00> : vector<16x16xf32>
    %160 = tpu.matmul %159, %158, %cst_68 {dimension_numbers = #tpu.dot_dimension_numbers<[1], [0], [0], [1], [0, 0, 1, 1], [], []>} : vector<16x16xbf16>, vector<16x16xbf16>, vector<16x16xf32> -> vector<16x16xf32>
    %161 = vector.shape_cast %160 : vector<16x16xf32> to vector<1x16x16xf32>
    %c0_69 = arith.constant 0 : index
    %c0_70 = arith.constant 0 : index
    %162 = vector.load %arg11[%c0_69, %c0_70] : memref<1x16xf32, #tpu.memory_space<vmem>>, vector<1x16xf32>
    %163 = vector.shape_cast %162 : vector<1x16xf32> to vector<1x1x16xf32>
    %164 = vector.broadcast %163 : vector<1x1x16xf32> to vector<1x16x16xf32>
    %165 = arith.addf %161, %164 : vector<1x16x16xf32>
    %cst_71 = arith.constant 0.000000e+00 : f32
    %166 = vector.broadcast %cst_71 : f32 to vector<1x16x16xf32>
    %167 = arith.maximumf %165, %166 : vector<1x16x16xf32>
    %c0_72 = arith.constant 0 : index
    %c0_73 = arith.constant 0 : index
    %168 = vector.load %arg12[%c0_72, %c0_73] : memref<1x16xf32, #tpu.memory_space<vmem>>, vector<1x16xf32>
    %169 = vector.shape_cast %168 : vector<1x16xf32> to vector<1x1x16xf32>
    %170 = vector.broadcast %169 : vector<1x1x16xf32> to vector<1x16x16xf32>
    %171 = arith.mulf %167, %170 : vector<1x16x16xf32>
    %c0_74 = arith.constant 0 : index
    %c0_75 = arith.constant 0 : index
    %172 = vector.load %arg13[%c0_74, %c0_75] : memref<1x16xf32, #tpu.memory_space<vmem>>, vector<1x16xf32>
    %173 = vector.shape_cast %172 : vector<1x16xf32> to vector<1x1x16xf32>
    %174 = vector.broadcast %173 : vector<1x1x16xf32> to vector<1x16x16xf32>
    %175 = arith.addf %171, %174 : vector<1x16x16xf32>
    %cst_76 = arith.constant dense<0.000000e+00> : vector<1x16xf32>
    %176 = vector.multi_reduction <add>, %175, %cst_76 [1] : vector<1x16x16xf32> to vector<1x16xf32>
    %177 = vector.shape_cast %176 : vector<1x16xf32> to vector<1x1x16xf32>
    %cst_77 = arith.constant 1.600000e+01 : f32
    %178 = vector.broadcast %cst_77 : f32 to vector<1x1x16xf32>
    %179 = arith.divf %177, %178 : vector<1x1x16xf32>
    %180 = arith.truncf %179 : vector<1x1x16xf32> to vector<1x1x16xbf16>
    %c0_78 = arith.constant 0 : index
    %c0_79 = arith.constant 0 : index
    %181 = vector.load %arg14[%c0_78, %c0_79] : memref<16x32xbf16, #tpu.memory_space<vmem>>, vector<16x32xbf16>
    %182 = vector.shape_cast %180 : vector<1x1x16xbf16> to vector<1x16xbf16>
    %cst_80 = arith.constant dense<0.000000e+00> : vector<1x32xf32>
    %183 = tpu.matmul %182, %181, %cst_80 {dimension_numbers = #tpu.dot_dimension_numbers<[1], [0], [0], [1], [0, 0, 1, 1], [], []>} : vector<1x16xbf16>, vector<16x32xbf16>, vector<1x32xf32> -> vector<1x32xf32>
    %184 = vector.shape_cast %183 : vector<1x32xf32> to vector<1x1x32xf32>
    %c0_81 = arith.constant 0 : index
    %c0_82 = arith.constant 0 : index
    %185 = vector.load %arg15[%c0_81, %c0_82] : memref<1x32xf32, #tpu.memory_space<vmem>>, vector<1x32xf32>
    %186 = vector.shape_cast %185 : vector<1x32xf32> to vector<1x1x32xf32>
    %187 = arith.addf %184, %186 : vector<1x1x32xf32>
    %cst_83 = arith.constant 0.000000e+00 : f32
    %188 = vector.broadcast %cst_83 : f32 to vector<1x1x32xf32>
    %189 = arith.maximumf %187, %188 : vector<1x1x32xf32>
    %190 = arith.truncf %189 : vector<1x1x32xf32> to vector<1x1x32xbf16>
    %c0_84 = arith.constant 0 : index
    %c0_85 = arith.constant 0 : index
    %191 = vector.load %arg16[%c0_84, %c0_85] : memref<32x16xbf16, #tpu.memory_space<vmem>>, vector<32x16xbf16>
    %192 = vector.shape_cast %190 : vector<1x1x32xbf16> to vector<1x32xbf16>
    %cst_86 = arith.constant dense<0.000000e+00> : vector<1x16xf32>
    %193 = tpu.matmul %192, %191, %cst_86 {dimension_numbers = #tpu.dot_dimension_numbers<[1], [0], [0], [1], [0, 0, 1, 1], [], []>} : vector<1x32xbf16>, vector<32x16xbf16>, vector<1x16xf32> -> vector<1x16xf32>
    %194 = vector.shape_cast %193 : vector<1x16xf32> to vector<1x1x16xf32>
    %c0_87 = arith.constant 0 : index
    %c0_88 = arith.constant 0 : index
    %195 = vector.load %arg17[%c0_87, %c0_88] : memref<1x16xf32, #tpu.memory_space<vmem>>, vector<1x16xf32>
    %196 = vector.shape_cast %195 : vector<1x16xf32> to vector<1x1x16xf32>
    %197 = arith.addf %194, %196 : vector<1x1x16xf32>
    %198 = arith.negf %197 : vector<1x1x16xf32>
    %199 = math.exp %198 : vector<1x1x16xf32>
    %cst_89 = arith.constant 1.000000e+00 : f32
    %200 = vector.broadcast %cst_89 : f32 to vector<1x1x16xf32>
    %201 = arith.addf %200, %199 : vector<1x1x16xf32>
    %202 = arith.divf %200, %201 : vector<1x1x16xf32>
    %203 = vector.broadcast %202 : vector<1x1x16xf32> to vector<1x16x16xf32>
    %204 = arith.mulf %175, %203 : vector<1x16x16xf32>
    %205 = arith.addf %204, %0 : vector<1x16x16xf32>
    %c0_90 = arith.constant 0 : index
    %c0_91 = arith.constant 0 : index
    %c0_92 = arith.constant 0 : index
    %206 = vector.load %arg18[%c0_90, %c0_91, %c0_92] : memref<1x16x16xf32, #tpu.memory_space<vmem>>, vector<1x16x16xf32>
    tpu.vector_store %arg18[%c0_90, %c0_91, %c0_92], %205 {strides = array<i32>} : memref<1x16x16xf32, #tpu.memory_space<vmem>>, vector<1x16x16xf32>,
    return
  }
  func.func @transform_0(%arg0: i32) -> (i32, i32, i32) {
    %c0_i32 = arith.constant 0 : i32
    %c0_i32_0 = arith.constant 0 : i32
    %c0_i32_1 = arith.constant 0 : i32
    return %arg0, %c0_i32, %c0_i32_0 : i32, i32, i32
  }
  func.func @transform_1(%arg0: i32) -> (i32, i32) {
    %c0_i32 = arith.constant 0 : i32
    %c0_i32_0 = arith.constant 0 : i32
    %c0_i32_1 = arith.constant 0 : i32
    return %c0_i32, %c0_i32_0 : i32, i32
  }
  func.func @transform_2(%arg0: i32) -> (i32, i32) {
    %c0_i32 = arith.constant 0 : i32
    %c0_i32_0 = arith.constant 0 : i32
    %c0_i32_1 = arith.constant 0 : i32
    return %c0_i32, %c0_i32_0 : i32, i32
  }
  func.func @transform_3(%arg0: i32) -> (i32, i32) {
    %c0_i32 = arith.constant 0 : i32
    %c0_i32_0 = arith.constant 0 : i32
    %c0_i32_1 = arith.constant 0 : i32
    return %c0_i32, %c0_i32_0 : i32, i32
  }
  func.func @transform_4(%arg0: i32) -> (i32, i32) {
    %c0_i32 = arith.constant 0 : i32
    %c0_i32_0 = arith.constant 0 : i32
    %c0_i32_1 = arith.constant 0 : i32
    return %c0_i32, %c0_i32_0 : i32, i32
  }
  func.func @transform_5(%arg0: i32) -> (i32, i32, i32) {
    %c0_i32 = arith.constant 0 : i32
    %c0_i32_0 = arith.constant 0 : i32
    %c0_i32_1 = arith.constant 0 : i32
    %c0_i32_2 = arith.constant 0 : i32
    return %c0_i32, %c0_i32_0, %c0_i32_1 : i32, i32, i32
  }
  func.func @transform_6(%arg0: i32) -> (i32, i32, i32) {
    %c0_i32 = arith.constant 0 : i32
    %c0_i32_0 = arith.constant 0 : i32
    %c0_i32_1 = arith.constant 0 : i32
    %c0_i32_2 = arith.constant 0 : i32
    return %c0_i32, %c0_i32_0, %c0_i32_1 : i32, i32, i32
  }
  func.func @transform_7(%arg0: i32) -> (i32, i32, i32) {
    %c0_i32 = arith.constant 0 : i32
    %c0_i32_0 = arith.constant 0 : i32
    %c0_i32_1 = arith.constant 0 : i32
    %c0_i32_2 = arith.constant 0 : i32
    return %c0_i32, %c0_i32_0, %c0_i32_1 : i32, i32, i32
  }
  func.func @transform_8(%arg0: i32) -> (i32, i32, i32) {
    %c0_i32 = arith.constant 0 : i32
    %c0_i32_0 = arith.constant 0 : i32
    %c0_i32_1 = arith.constant 0 : i32
    %c0_i32_2 = arith.constant 0 : i32
    return %c0_i32, %c0_i32_0, %c0_i32_1 : i32, i32, i32
  }
  func.func @transform_9(%arg0: i32) -> (i32, i32) {
    %c0_i32 = arith.constant 0 : i32
    %c0_i32_0 = arith.constant 0 : i32
    %c0_i32_1 = arith.constant 0 : i32
    return %c0_i32, %c0_i32_0 : i32, i32
  }
  func.func @transform_10(%arg0: i32) -> (i32, i32) {
    %c0_i32 = arith.constant 0 : i32
    %c0_i32_0 = arith.constant 0 : i32
    %c0_i32_1 = arith.constant 0 : i32
    return %c0_i32, %c0_i32_0 : i32, i32
  }
  func.func @transform_11(%arg0: i32) -> (i32, i32) {
    %c0_i32 = arith.constant 0 : i32
    %c0_i32_0 = arith.constant 0 : i32
    %c0_i32_1 = arith.constant 0 : i32
    return %c0_i32, %c0_i32_0 : i32, i32
  }
  func.func @transform_12(%arg0: i32) -> (i32, i32) {
    %c0_i32 = arith.constant 0 : i32
    %c0_i32_0 = arith.constant 0 : i32
    %c0_i32_1 = arith.constant 0 : i32
    return %c0_i32, %c0_i32_0 : i32, i32
  }
  func.func @transform_13(%arg0: i32) -> (i32, i32) {
    %c0_i32 = arith.constant 0 : i32
    %c0_i32_0 = arith.constant 0 : i32
    %c0_i32_1 = arith.constant 0 : i32
    return %c0_i32, %c0_i32_0 : i32, i32
  }
  func.func @transform_14(%arg0: i32) -> (i32, i32) {
    %c0_i32 = arith.constant 0 : i32
    %c0_i32_0 = arith.constant 0 : i32
    %c0_i32_1 = arith.constant 0 : i32
    return %c0_i32, %c0_i32_0 : i32, i32
  }
  func.func @transform_15(%arg0: i32) -> (i32, i32) {
    %c0_i32 = arith.constant 0 : i32
    %c0_i32_0 = arith.constant 0 : i32
    %c0_i32_1 = arith.constant 0 : i32
    return %c0_i32, %c0_i32_0 : i32, i32
  }
  func.func @transform_16(%arg0: i32) -> (i32, i32) {
    %c0_i32 = arith.constant 0 : i32
    %c0_i32_0 = arith.constant 0 : i32
    %c0_i32_1 = arith.constant 0 : i32
    return %c0_i32, %c0_i32_0 : i32, i32
  }
  func.func @transform_17(%arg0: i32) -> (i32, i32, i32) {
    %c0_i32 = arith.constant 0 : i32
    %c0_i32_0 = arith.constant 0 : i32
    %c0_i32_1 = arith.constant 0 : i32
    return %arg0, %c0_i32, %c0_i32_0 : i32, i32, i32
  }
}

</mosaic_0001>

<bundles_post_ra>
// kernel: _forward_impl.1
= control target key start
LH: loop header
LB: loop body
LE: loop exit
PB: predicated region body
PF: predicated region fallthrough
CT: control target
= control target key end

     0   :  { %s2532_s0 = inlined_call_operand.vmem [shape: f32[2,16,16], index: 0, kind: input, shape index: {}]   ;;  %s2533_s1 = inlined_call_operand.vmem [shape: bf16[16,16], index: 1, kind: input, shape index: {}]   ;;  %s2534_s2 = inlined_call_operand.hbm [shape: f32[1,16], index: 2, kind: input, shape index: {}]   ;;  %s2535_s3 = inlined_call_operand.hbm [shape: f32[1,16], index: 3, kind: input, shape index: {}]   ;;  %s2536_s4 = inlined_call_operand.vmem [shape: f32[1,16], index: 4, kind: input, shape index: {}]   ;;  %s2537_s5 = inlined_call_operand.vmem [shape: bf16[3,12,4], index: 5, kind: input, shape index: {}]   ;;  %s2538_s6 = inlined_call_operand.hbm [shape: f32[3,1,4], index: 6, kind: input, shape index: {}]   ;;  %s2539_s7 = inlined_call_operand.vmem [shape: f32[3,1,4], index: 7, kind: input, shape index: {}]   ;;  %s2540_s8 = inlined_call_operand.vmem [shape: f32[3,1,4], index: 8, kind: input, shape index: {}]   ;;  %s2541_s9 = inlined_call_operand.vmem [shape: bf16[16,16], index: 9, kind: input, shape index: {}]   ;;  %s2542_s10 = inlined_call_operand.hbm [shape: f32[1,16], index: 10, kind: input, shape index: {}]   ;;  %s2543_s11 = inlined_call_operand.hbm [shape: f32[1,16], index: 11, kind: input, shape index: {}]   ;;  %s2544_s12 = inlined_call_operand.vmem [shape: f32[1,16], index: 12, kind: input, shape index: {}]   ;;  %s2545_s13 = inlined_call_operand.vmem [shape: bf16[16,32], index: 13, kind: input, shape index: {}]   ;;  %s2546_s14 = inlined_call_operand.hbm [shape: f32[1,32], index: 14, kind: input, shape index: {}]   ;;  %s2547_s15 = inlined_call_operand.vmem [shape: bf16[32,16], index: 15, kind: input, shape index: {}]   ;;  %s2548_s16 = inlined_call_operand.vmem [shape: f32[1,16], index: 16, kind: input, shape index: {}]   ;;  %s2549_s17 = inlined_call_operand.hbm [shape: f32[2,16,16], index: 17, kind: output, shape index: {}]  }
   0x1   :  { %2562 = sst [smem:[#allocation26_spill]] %s2532_s0 }
   0x2   :  { %2563 = sst [smem:[#allocation27_spill]] %s2533_s1 }
   0x3   :  { %2564 = sst [smem:[#allocation28_spill]] %s2534_s2 }
   0x4   :  { %2565 = sst [smem:[#allocation29_spill]] %s2535_s3 }
   0x5   :  { %2566 = sst [smem:[#allocation30_spill]] %s2548_s16 }
   0x6   :  { %2567 = sst [smem:[#allocation31_spill]] %s2549_s17 }
   0x7   :  { %22 = vsyncpa [#allocation3], 0 }
   0x8   :  { %23 = vsyncpa [#allocation6], 0 }
   0x9   :  { %24 = vsyncpa [#allocation9], 0 }
   0xa   :  { %25 = vsyncpa [#allocation12], 0 }
   0xb   :  { %26 = vsyncpa [#allocation4], 0 }
   0xc   :  { %28 = vsyncpa [#allocation4 + $0x1], 0  ;;  %s2070_s24 = smov 0   ;;  %s2072_s25 = smov 0  }
   0xd   :  { %s2074_s26 = smov 0   ;;  %s2076_s27 = smov 0  }
   0xe LB: > { %2568 = sst [smem:[#allocation19_spill]] %s1950_s24  ;;  %s2091_s28 = sadd.s32 4294967295, %s1962_s27   ;;  %s1962_s27 = sphi %s2076_s27, %s2601_s27   ;;  %s1958_s26 = sphi %s2074_s26, %s2603_s26   ;;  %s1954_s25 = sphi %s2072_s25, %s2605_s25   ;;  %s1950_s24 = sphi %s2070_s24, %s2604_s24  }
   0xf   : > { %2569 = sst [smem:[#allocation20_spill]] %s1958_s26  ;;  %s1471_s29 = sadd.s32 4294967294, %s1962_s27  }
  0x10   : > { %2570 = sst [smem:[#allocation21_spill]] %s1962_s27  ;;  %s2095_s0 = sadd.s32 1, %s1962_s27  }
  0x11   : > { %2571 = sst [smem:[#allocation22_spill]] %s2095_s0  ;;  %s403_s30 = sadd.s32 1, %s1958_s26 }
  0x12   : > { %s400_s18 = ssub.s32 %s1962_s27, %s2095_s0  ;;  %p413_p0 = scmp.ne.s32.totalorder %s1958_s26, %s1954_s25 }
  0x13   : > { %p401_p1 = scmp.eq.s32.totalorder %s400_s18, 0  ;;  %p414_p2 = scmp.eq.s32.totalorder %s2091_s28, 1 }
  0x14   : > { %p419_p3 = scmp.ne.s32.totalorder %s1954_s25, %s1950_s24  ;;  %p420_p4 = scmp.eq.s32.totalorder %s1471_s29, 1 }
  0x15   : > { %s2106_s19 = scalar_select %p401_p1, %s1958_s26, %s403_s30  }
  0x16   : > { %p2108_p5 = por %p414_p2, %p413_p0  ;;  %p2112_p6 = por %p420_p4, %p419_p3 }
  0x17   : > { %2572 = sst [smem:[#allocation23_spill]] %s2106_s19  ;;  %p1472_p7 = scmp.ge.s32.totalorder %s1962_s27, 1 }
  0x18   : > { %s2573_s1 = scalar_select %p2108_p5, 1, 0 }
  0x19   : > { %s2575_s20 = scalar_select %p2112_p6, 1, 0 }
  0x1a   : > { %2574 = sst [smem:[#allocation24_spill]] %s2573_s1  ;;  %p427_p8 = scmp.lt.s32.totalorder %s1962_s27, 3 }
  0x1b   : > { %2576 = sst [smem:[#allocation25_spill]] %s2575_s20  ;;  %p2557_p9 = scmp.eq.s32.totalorder %s2091_s28, 0 }
  0x1c   : > { %p2119_p10 = pnand %p1472_p7, %p427_p8  ;;  %s1964_s22 = smov [#allocation5]  }
  0x1d   : > { %s454_s23 = sshll.u32 %s1964_s22, 4  ;;  %s1965_s29 = smov [#allocation8]   ;;  %s455_s23 = int_to_ptr.vmem [resolvable:$true] %s454_s23 }
  0x1e   : > { %s2577_s21 = scalar_select %p2119_p10, 1, 0 }
  0x1f   : > { %p1621_p11 = pneg %p2119_p10  ;;  %s493_s30 = sshll.u32 %s1965_s29, 4  ;;  %s2131_s30 = int_to_ptr.vmem [resolvable:$true] %s493_s30 }
  0x20   : > { %s1966_s19 = smov [#allocation2]   ;;  %s2579_s3 = sld [smem:[#allocation29_spill]] }
  0x21   : > { %p2127_p12 = pnand %p2557_p9, %p1621_p11  ;;  %s443_s26 = sshll.u32 %s1966_s19, 4  ;;  %s2133_s26 = int_to_ptr.vmem [resolvable:$true] %s443_s26 }
  0x23   : > { %p2143_p0 = pneg %p2127_p12 }
  0x26   : > { %s1716_s22 = scalar_lea.hbm %s2579_s3, 16 }
  0x27   : > { %p1717_p13 = scmp.ne.s32.totalorder %s2579_s3, %s1716_s22  ;;  %p1723_p3 = scmp.lt.u32.totalorder %s1716_s22, %s2579_s3 }
  0x29   : > { %p1719_p1 = pnand %p2143_p0, %p1717_p13 }
  0x2b   : > { %p1720_p2 = pneg %p1719_p1 }
  0x2d   : > { %p1725_p4 = pnand %p1723_p3, %p1720_p2 }
  0x2f   : > { %1728 = shalt.err (!%p1725_p4)
}
  0x30   : > { %s1729_s0 = scalar_lea.vmem %s455_s23, 16  ;;  %s1736_s24 = scalar_lea.vmem %s455_s23, 32 }
  0x31   : > { %p1730_p7 = scmp.ne.s32.totalorder %s455_s23, %s1729_s0  ;;  %p1737_p9 = scmp.lt.s32.totalorder %s455_s23, %s455_s23 }
  0x32   : > { %p1738_p6 = scmp.lt.s32.totalorder %s1736_s24, %s1729_s0 }
  0x33   : > { %p1732_p8 = pnand %p1730_p7, %p2143_p0 }
  0x34   : > { %p1739_p5 = por %p1738_p6, %p1737_p9 }
  0x35   : > { %p1733_p11 = pneg %p1732_p8 }
  0x37   : > { %p1740_p10 = pnand %p1739_p5, %p1733_p11 }
  0x39   : > { %1743 = shalt.err (!%p1740_p10)
}
  0x3a   : > { %1627 = dma.hbm_to_vmem [thread:$0]  (!%p2127_p12), %s2579_s3, 16, %s455_s23, [#allocation6]  }
  0x3b   : > { %s1744_s19 = scalar_lea.hbm %s2542_s10, 16 }
  0x3c   : > { %p1745_p13 = scmp.ne.s32.totalorder %s2542_s10, %s1744_s19  ;;  %p1751_p5 = scmp.lt.u32.totalorder %s1744_s19, %s2542_s10 }
  0x3e   : > { %p1747_p1 = pnand %p1745_p13, %p2143_p0 }
  0x40   : > { %p1748_p6 = pneg %p1747_p1 }
  0x42   : > { %p1753_p9 = pnand %p1751_p5, %p1748_p6 }
  0x44   : > { %1756 = shalt.err (!%p1753_p9)
}
  0x45   : > { %s1757_s23 = scalar_lea.vmem %s2131_s30, 16  ;;  %s1764_s16 = scalar_lea.vmem %s2131_s30, 32 }
  0x46   : > { %p1758_p10 = scmp.ne.s32.totalorder %s2131_s30, %s1757_s23  ;;  %p1765_p4 = scmp.lt.s32.totalorder %s2131_s30, %s2131_s30 }
  0x47   : > { %p1766_p7 = scmp.lt.s32.totalorder %s1764_s16, %s1757_s23 }
  0x48   : > { %p1760_p2 = pnand %p1758_p10, %p2143_p0 }
  0x49   : > { %p1767_p8 = por %p1766_p7, %p1765_p4 }
  0x4a   : > { %p1761_p3 = pneg %p1760_p2 }
  0x4c   : > { %p1768_p11 = pnand %p1767_p8, %p1761_p3 }
  0x4e   : > { %1771 = shalt.err (!%p1768_p11)
}
  0x4f   : > { %1633 = dma.hbm_to_vmem [thread:$0]  (!%p2127_p12), %s2542_s10, 16, %s2131_s30, [#allocation9]  }
  0x50   : > { %s2581_s2 = sld [smem:[#allocation28_spill]] }
  0x56   : > { %s1772_s22 = scalar_lea.hbm %s2581_s2, 16 }
  0x57   : > { %p1773_p13 = scmp.ne.s32.totalorder %s2581_s2, %s1772_s22  ;;  %p1779_p5 = scmp.lt.u32.totalorder %s1772_s22, %s2581_s2 }
  0x59   : > { %p1775_p1 = pnand %p1773_p13, %p2143_p0 }
  0x5b   : > { %p1776_p6 = pneg %p1775_p1 }
  0x5d   : > { %p1781_p9 = pnand %p1779_p5, %p1776_p6 }
  0x5f   : > { %1784 = shalt.err (!%p1781_p9)
}
  0x60   : > { %s1785_s30 = scalar_lea.vmem %s2133_s26, 16  ;;  %s1792_s16 = scalar_lea.vmem %s2133_s26, 32 }
  0x61   : > { %p1786_p10 = scmp.ne.s32.totalorder %s2133_s26, %s1785_s30  ;;  %p1793_p4 = scmp.lt.s32.totalorder %s2133_s26, %s2133_s26 }
  0x62   : > { %p1794_p7 = scmp.lt.s32.totalorder %s1792_s16, %s1785_s30 }
  0x63   : > { %p1788_p2 = pnand %p1786_p10, %p2143_p0 }
  0x64   : > { %p1795_p8 = por %p1794_p7, %p1793_p4 }
  0x65   : > { %p1789_p3 = pneg %p1788_p2 }
  0x67   : > { %p1796_p11 = pnand %p1795_p8, %p1789_p3 }
  0x69   : > { %1799 = shalt.err (!%p1796_p11)
}
  0x6a   : > { %1624 = dma.hbm_to_vmem [thread:$0]  (!%p2127_p12), %s2581_s2, 16, %s2133_s26, [#allocation3]  }
  0x6b   : > { %s1967_s20 = smov [#allocation7]   ;;  %s1800_s0 = scalar_lea.hbm %s2538_s6, 48 }
  0x6c   : > { %s470_s17 = sshll.u32 %s1967_s20, 4  ;;  %p1801_p13 = scmp.ne.s32.totalorder %s2538_s6, %s1800_s0  ;;  %s471_s17 = int_to_ptr.vmem [resolvable:$true] %s470_s17 }
  0x6d   : > { %p1807_p5 = scmp.lt.u32.totalorder %s1800_s0, %s2538_s6 }
  0x6e   : > { %p1803_p1 = pnand %p1801_p13, %p2143_p0 }
  0x70   : > { %p1804_p6 = pneg %p1803_p1 }
  0x72   : > { %p1809_p9 = pnand %p1807_p5, %p1804_p6 }
  0x74   : > { %1812 = shalt.err (!%p1809_p9)
}
  0x75   : > { %s1813_s26 = scalar_lea.vmem %s471_s17, 48  ;;  %s1820_s1 = scalar_lea.vmem %s471_s17, 64 }
  0x76   : > { %p1814_p10 = scmp.ne.s32.totalorder %s471_s17, %s1813_s26  ;;  %p1821_p4 = scmp.lt.s32.totalorder %s471_s17, %s471_s17 }
  0x77   : > { %p1822_p7 = scmp.lt.s32.totalorder %s1820_s1, %s1813_s26 }
  0x78   : > { %p1816_p2 = pnand %p1814_p10, %p2143_p0 }
  0x79   : > { %p1823_p8 = por %p1822_p7, %p1821_p4 }
  0x7a   : > { %p1817_p3 = pneg %p1816_p2 }
  0x7c   : > { %p1824_p11 = pnand %p1823_p8, %p1817_p3 }
  0x7e   : > { %1827 = shalt.err (!%p1824_p11)
}
  0x7f   : > { %s1968_s27 = smov 16   ;;  %s1969_s20 = smov 1  }
  0x80   : > { %1630 = dma.hbm_to_vmem [thread:$0]  (!%p2127_p12), %s2538_s6, 48, %s471_s17, [#allocation6], %s1968_s27, %s1968_s27, %s1969_s20  }
  0x81   : > { %s1970_s0 = smov [#allocation10]   ;;  %s1971_s23 = smov [#allocation11]  }
  0x82   : > { %s504_s24 = sshll.u32 %s1970_s0, 4  ;;  %s521_s30 = sshll.u32 %s1971_s23, 4  ;;  %s505_s24 = int_to_ptr.vmem [resolvable:$true] %s504_s24  ;;  %s2225_s30 = int_to_ptr.vmem [resolvable:$true] %s521_s30 }
  0x83   : > { %s1828_s1 = scalar_lea.hbm %s2543_s11, 16 }
  0x84   : > { %p1829_p13 = scmp.ne.s32.totalorder %s2543_s11, %s1828_s1  ;;  %p1835_p5 = scmp.lt.u32.totalorder %s1828_s1, %s2543_s11 }
  0x86   : > { %p1831_p1 = pnand %p1829_p13, %p2143_p0 }
  0x88   : > { %p1832_p6 = pneg %p1831_p1 }
  0x8a   : > { %p1837_p9 = pnand %p1835_p5, %p1832_p6 }
  0x8c   : > { %1840 = shalt.err (!%p1837_p9)
}
  0x8d   : > { %s1841_s27 = scalar_lea.vmem %s505_s24, 16  ;;  %s1848_s20 = scalar_lea.vmem %s505_s24, 32 }
  0x8e   : > { %p1842_p10 = scmp.ne.s32.totalorder %s505_s24, %s1841_s27  ;;  %p1849_p4 = scmp.lt.s32.totalorder %s505_s24, %s505_s24 }
  0x8f   : > { %p1850_p7 = scmp.lt.s32.totalorder %s1848_s20, %s1841_s27 }
  0x90   : > { %p1844_p2 = pnand %p1842_p10, %p2143_p0 }
  0x91   : > { %p1851_p8 = por %p1850_p7, %p1849_p4 }
  0x92   : > { %p1845_p3 = pneg %p1844_p2 }
  0x94   : > { %p1852_p11 = pnand %p1851_p8, %p1845_p3 }
  0x96   : > { %1855 = shalt.err (!%p1852_p11)
}
  0x97   : > { %1636 = dma.hbm_to_vmem [thread:$0]  (!%p2127_p12), %s2543_s11, 16, %s505_s24, [#allocation9]  }
  0x98   : > { %s1856_s23 = scalar_lea.hbm %s2546_s14, 16 }
  0x99   : > { %p1857_p13 = scmp.ne.s32.totalorder %s2546_s14, %s1856_s23  ;;  %p1863_p5 = scmp.lt.u32.totalorder %s1856_s23, %s2546_s14 }
  0x9b   : > { %p1859_p1 = pnand %p1857_p13, %p2143_p0 }
  0x9d   : > { %p1860_p6 = pneg %p1859_p1 }
  0x9f   : > { %p1865_p9 = pnand %p1863_p5, %p1860_p6 }
  0xa1   : > { %1868 = shalt.err (!%p1865_p9)
}
  0xa2   : > { %s1869_s24 = scalar_lea.vmem %s2225_s30, 16  ;;  %s1876_s17 = scalar_lea.vmem %s2225_s30, 32 }
  0xa3   : > { %p1870_p10 = scmp.ne.s32.totalorder %s2225_s30, %s1869_s24  ;;  %p1877_p4 = scmp.lt.s32.totalorder %s2225_s30, %s2225_s30 }
  0xa4   : > { %p1878_p7 = scmp.lt.s32.totalorder %s1876_s17, %s1869_s24 }
  0xa5   : > { %p1872_p2 = pnand %p1870_p10, %p2143_p0 }
  0xa6   : > { %p1879_p8 = por %p1878_p7, %p1877_p4 }
  0xa7   : > { %p1873_p3 = pneg %p1872_p2 }
  0xa9   : > { %p1880_p11 = pnand %p1879_p8, %p1873_p3 }
  0xab   : > { %1883 = shalt.err (!%p1880_p11)
}
  0xac   : > { %1639 = dma.hbm_to_vmem [thread:$0]  (!%p2127_p12), %s2546_s14, 16, %s2225_s30, [#allocation12]  }
  0xad   : > { %p2582_p13 = scmp.ne.s32.totalorder %s2577_s21, 0 }
  0xae   : > { %p2583_p0 = scmp.eq.s32.totalorder (!%p2582_p13), %s2091_s28, 0 }
  0xaf   : > { %548 = sbr.rel (%p2582_p13) target bundleno = 2300 (0x8fc), region = 88 }
  0xb6   : > { %1929 = dma.done.wait (%p2583_p0), [#allocation3], 16   ;;  %p2584_p1 = pmov %p2583_p0 }
  0xb7   : > { %p2585_p6 = pmov %p2583_p0 }
  0xb8   : > { %1931 = vsyncadd (%p2584_p1), [#allocation3], 4294967280 }
  0xb9   : > { %1933 = dma.done.wait (%p2585_p6), [#allocation6], 64   ;;  %p2586_p5 = pmov %p2583_p0 }
  0xba   : > { %p2587_p9 = pmov %p2583_p0 }
  0xbb   : > { %1935 = vsyncadd (%p2586_p5), [#allocation6], 4294967232 }
  0xbc   : > { %1937 = dma.done.wait (%p2587_p9), [#allocation9], 32   ;;  %p2588_p12 = pmov %p2583_p0 }
  0xbd   : > { %p2589_p10 = pmov %p2583_p0 }
  0xbe   : > { %1939 = vsyncadd (%p2588_p12), [#allocation9], 4294967264 }
  0xbf   : > { %1941 = dma.done.wait (%p2589_p10), [#allocation12], 16   ;;  %p2590_p2 = pmov %p2583_p0 }
  0xc0   : > { %p620_p3 = scmp.lt.s32.totalorder %s2091_s28, 1  ;;  %v1972_v0 = vmov 0.0   ;;  %vm1973_vm0 = vmmov 0   ;;  %s2591_s2 = sld [smem:[#allocation26_spill]]  ;;  %vm637_vm1 = vcmask 130048   ;;  %v711_v5 = vlaneseq }
  0xc1   : > { %1943 = vsyncadd (%p2590_p2), [#allocation12], 4294967280  ;;  %1551 = vmatprep.subr.bf16.mxu0 %v1972_v0  ;;  %1553 = vmatprep.mubr.msk.bf16.mxu0 %vm1973_vm0, %v1972_v0  ;;  %s2592_s23 = sld [smem:[#allocation27_spill]]  ;;  %v1492_v6 = vld [vmem:[#allocation2] ss:$0 sm:$0xff]  ;;  %vm778_vm2 = vcmask 1045504  }
  0xc2   : > { %s621_s21 = scalar_select %p620_p3, %s2091_s28, 1  ;;  %1557 = vmatprep.subr.bf16.mxu1 %v1972_v0  ;;  %1559 = vmatprep.mubr.msk.bf16.mxu1 %vm1973_vm0, %v1972_v0  ;;  %v2311_v7 = vshrl.u32 %v711_v5, 7  ;;  %v1705_v9 = vld [vmem:[%s2537_s5] sm:$0x3f]   ;;  %vm761_vm7 = vcmask 31744   ;;  %vm765_vm8 = vcmask 64512  }
  0xc3   : > { %v1493_v12 = vld [vmem:[#allocation5] ss:$0 sm:$0xff]  ;;  %v780_v14 = vsel %vm778_vm2, %v1705_v9, 0  ;;  %v1494_v19 = vld [vmem:[%s2536_s4] ss:$0 sm:$0xff]  ;;  %s1974_s24 = smov 124  }
  0xc4   : > { %s1534_s18 = sshll.u32 %s621_s21, 4  ;;  %v713_v18 = vadd.s32 8, %v2311_v7  ;;  %1558 = vmatpush3.bf16.msra.mxu1 %v780_v14  ;;  %vm745_vm3 = vcmp.lt.s32.totalorder %v2311_v7, 6  ;;  %s1975_s17 = smov 4   ;;  %v2348_v33 = vadd.s32 4294967294, %v2311_v7  ;;  %vm732_vm5 = vcmp.lt.s32.totalorder %v2311_v7, 2 }
  0xc5   : > { %1569 = vmatprep.subr.bf16.mxu1 %v1972_v0  ;;  %s1976_s27 = smov 8   ;;  %vm775_vm9 = vcmask 97280   ;;  %v1706_v44 = vld [vmem:[%s2537_s5 + $0x8] sm:$0x3f]   ;;  %v1497_v46 = vld [vmem:[#allocation7] ss:$0 sm:$0xff] }
  0xc6   : > { %s624_s3 = scalar_lea.vmem %s2591_s2, %s1534_s18  ;;  %v2324_v24 = vadd.s32 2, %v713_v18  ;;  %vm716_vm6 = vcmp.ge.s32.totalorder %v2348_v33, 0  ;;  %v900_v45 = vsel %vm778_vm2, %v1706_v44, 0  ;;  %v1498_v50 = vld [vmem:[%s2539_s7] ss:$0 sm:$0xff]  ;;  %vm1273_vm10 = vcmask 261120  }
  0xc7   : > { %v1704_v1 = vld [vmem:[%s2592_s23] sm:$0xff]   ;;  %v2303_v3 = vld [vmem:[%s624_s3 + $0x8] sm:$0xff]  ;;  %s2593_s22 = sld [smem:[#allocation30_spill]]  ;;  %s2594_s20 = sld [smem:[#allocation24_spill]] }
  0xc8   : > { %v2301_v2 = vld [vmem:[%s624_s3] sm:$0xff]  ;;  %1552 = vmatpush3.bf16.msra.mxu0 %v1704_v1  ;;  %vm727_vm4 = vcmp.lt.s32.totalorder %v2324_v24, 16  ;;  %s1977_s3 = smov 120   ;;  %s1535_s21 = sshll.u32 %s2091_s28, 8 }
  0xc9   : > { %v628_v4 = vpack.c.bf16 %v2303_v3, %v2301_v2  ;;  %1563 = vmatprep.subr.bf16.mxu0 %v1972_v0  ;;  %v1499_v56 = vld [vmem:[%s2540_s8] ss:$0 sm:$0xff]  ;;  %v1513_v33 = vld [vmem:[#allocation7 + $0x2] ss:$0 sm:$0xff]  ;;  %s1978_s23 = smov [#allocation13]  }
  0xca   : > { %v1708_v24 = vld [vmem:[%s2541_s9] sm:$0xff]   ;;  %s1888_s16 = sshll.u32 %s1978_s23, 4  ;;  %s1889_s16 = int_to_ptr.vmem [resolvable:$false] %s1888_s16 }
  0xcb   : > { %1554 = vmatmul.mubr.msk.bf16.vlgmr.msra.gmra.mrb[0].mxu0 %vm637_vm1, %v628_v4  ;;  %s1890_s26 = scalar_lea.vmem %s1889_s16, 512 }
  0xcc   : > { %1565 = vmatprep.mubr.msk.bf16.mxu0 %vm1973_vm0, %v1972_v0  ;;  %1564 = vmatpush3.bf16.msra.mxu0 %v900_v45 }
  0xcd   : > { %1575 = vmatprep.subr.bf16.mxu0 %v1972_v0  ;;  %p2596_p7 = scmp.ne.s32.totalorder %s2594_s20, 0 }
 0x19e   : > { %v675_v8 = vpop.f32.mrb[0].mxu0 }
 0x19f   : > { %v689_v10 = vadd.f32 %v1492_v6, %v675_v8  ;;  %v1555_v11 = vpop.f32.mrb[1].mxu0 }
 0x1a0   : > { %v678_v13 = vpop.f32.mrb[2].mxu0 }
 0x1a1   : > { %v691_v15 = vmax.f32 %v689_v10, 0.0  ;;  %v690_v16 = vadd.f32 %v1492_v6, %v678_v13  ;;  %v1556_v17 = vpop.f32.mrb[3].mxu0 }
 0x1a3   : > { %v700_v20 = vmul.f32 %v1493_v12, %v691_v15  ;;  %v692_v21 = vmax.f32 %v690_v16, 0.0 }
 0x1a5   : > { %v2322_v22 = vadd.f32 %v1494_v19, %v700_v20  ;;  %v701_v23 = vmul.f32 %v1493_v12, %v692_v21 }
 0x1a7   : > { %v2326_v25 = vadd.f32 %v1494_v19, %v701_v23  ;;  %855 = vrot.lane.b32.xlu1 %v2322_v22, %s1974_s24  ;;  %v743_v27 = vrot.slane %v2322_v22, 2  ;;  %v730_v35 = vrot.slane %v2322_v22, 6 }
 0x1a9   : > { %v2332_v26 = vpack.c.bf16 %v2326_v25, %v2322_v22  ;;  %v744_v28 = vrot.slane %v2326_v25, 2  ;;  %v731_v34 = vrot.slane %v2326_v25, 6 }
 0x1ab   : > { %857 = vrot.lane.b32.xlu1 %v2326_v25, %s1974_s24  ;;  %756 = vrot.lane.b32.xlu0 %v2332_v26, %s1975_s17  ;;  %v746_v29 = vsel %vm745_vm3, %v743_v27, %v744_v28  ;;  %v747_v30 = vsel %vm745_vm3, %v744_v28, %v743_v27  ;;  %v734_v36 = vsel %vm732_vm5, %v731_v34, %v730_v35  ;;  %v1707_v27 = vld [vmem:[%s2537_s5 + $0x10] sm:$0x3f]   ;;  %s617_s24 = sand.u32 1, %s1954_s25  }
 0x1ac   : > { %v753_v31 = vsel %vm727_vm4, %v747_v30, 0.0  ;;  %v733_v37 = vsel %vm732_vm5, %v730_v35, %v731_v34  ;;  %v739_v38 = vsel %vm716_vm6, %v734_v36, 0.0  ;;  %v1021_v28 = vsel %vm778_vm2, %v1707_v27, 0  ;;  %s2490_s28 = scalar_lea.sflag [#allocation4], %s617_s24 }
 0x1ad   : > { %v754_v32 = vpack.c.bf16 %v753_v31, %v746_v29  ;;  %v741_v40 = vpack.c.bf16 %v733_v37, %v739_v38  ;;  %v1506_v31 = vld [vmem:[%s2539_s7 + $0x1] ss:$0 sm:$0xff] }
 0x1ae   : > { %v1508_v37 = vld [vmem:[%s2540_s8 + $0x1] ss:$0 sm:$0xff] }
 0x1af   : > { %759 = vrot.lane.b32.xlu0 %v754_v32, %s1976_s27 }
 0x219   : > { %v856_v55 = vpop.permute.xlu1 %855 }
 0x21d   : > { %v757_v39 = vpop.permute.xlu0 %756  ;;  %v858_v63 = vpop.permute.xlu1 %857 }
 0x21e   : > { %v764_v41 = vsel %vm761_vm7, %v741_v40, %v757_v39 }
 0x221   : > { %v760_v42 = vpop.permute.xlu0 %759 }
 0x222   : > { %v767_v43 = vsel %vm765_vm8, %v764_v41, %v760_v42 }
 0x223   : > { %1560 = vmatmul.mubr.msk.bf16.vlgmr.msra.gmra.mrb[0].mxu1 %vm775_vm9, %v767_v43 }
 0x224   : > { %1571 = vmatprep.mubr.msk.bf16.mxu1 %vm1973_vm0, %v1972_v0  ;;  %1570 = vmatpush3.bf16.msra.mxu1 %v1021_v28 }
 0x225   : > { %1581 = vmatprep.subr.bf16.mxu1 %v1972_v0 }
 0x2f6   : > { %v816_v47 = vpop.f32.mrb[0].mxu1 }
 0x2f7   : > { %v830_v48 = vadd.f32 %v1497_v46, %v816_v47  ;;  %v1561_v49 = vpop.f32.mrb[1].mxu1 }
 0x2f8   : > { %v819_v51 = vpop.f32.mrb[2].mxu1 }
 0x2f9   : > { %v832_v52 = vmax.f32 %v830_v48, 0.0  ;;  %v831_v53 = vadd.f32 %v1497_v46, %v819_v51  ;;  %v1562_v54 = vpop.f32.mrb[3].mxu1 }
 0x2fb   : > { %v841_v57 = vmul.f32 %v1498_v50, %v832_v52  ;;  %v833_v58 = vmax.f32 %v831_v53, 0.0 }
 0x2fd   : > { %v2376_v59 = vadd.f32 %v1499_v56, %v841_v57  ;;  %v842_v60 = vmul.f32 %v1498_v50, %v833_v58 }
 0x2ff   : > { %v861_v61 = vadd.f32 %v856_v55, %v2376_v59  ;;  %v2379_v62 = vadd.f32 %v1499_v56, %v842_v60 }
 0x301   : > { %v862_v1 = vadd.f32 %v858_v63, %v2379_v62  ;;  %v852_v4 = vpack.c.bf16 %v2379_v62, %v2376_v59  ;;  %v863_v5 = vrot.slane %v861_v61, 6  ;;  %v871_v9 = vrot.slane %v861_v61, 2  ;;  %v1710_v59 = vld [vmem:[%s2547_s15] sm:$0xff]   ;;  %v1520_v62 = vld [vmem:[#allocation8] ss:$0 sm:$0xff] }
 0x303   : > { %v864_v6 = vrot.slane %v862_v1, 6  ;;  %v870_v8 = vpack.c.bf16 %v862_v1, %v861_v61  ;;  %v872_v10 = vrot.slane %v862_v1, 2 }
 0x305   : > { %879 = vrot.lane.b32.xlu0 %v870_v8, %s1975_s17  ;;  %v873_v11 = vsel %vm745_vm3, %v871_v9, %v872_v10  ;;  %v874_v12 = vsel %vm745_vm3, %v872_v10, %v871_v9  ;;  %v865_v13 = vsel %vm732_vm5, %v863_v5, %v864_v6  ;;  %v866_v14 = vsel %vm732_vm5, %v864_v6, %v863_v5 }
 0x306   : > { %v876_v15 = vsel %vm727_vm4, %v874_v12, 0.0  ;;  %v867_v16 = vsel %vm716_vm6, %v866_v14, 0.0 }
 0x307   : > { %v877_v17 = vpack.c.bf16 %v876_v15, %v873_v11  ;;  %v869_v18 = vpack.c.bf16 %v865_v13, %v867_v16  ;;  %v1515_v11 = vld [vmem:[%s2539_s7 + $0x2] ss:$0 sm:$0xff] }
 0x309   : > { %882 = vrot.lane.b32.xlu1 %v877_v17, %s1976_s27  ;;  %976 = vrot.lane.b32.xlu0 %v2322_v22, %s1977_s3  ;;  %v1504_v22 = vld [vmem:[#allocation7 + $0x1] ss:$0 sm:$0xff] }
 0x30d   : > { %978 = vrot.lane.b32.xlu1 %v2326_v25, %s1977_s3  ;;  %s2595_s3 = sld [smem:[#allocation31_spill]] }
 0x313   : > { %s2482_s19 = scalar_lea.hbm %s2595_s3, %s1535_s21 }
 0x377   : > { %v880_v19 = vpop.permute.xlu0 %879 }
 0x378   : > { %v886_v20 = vsel %vm761_vm7, %v869_v18, %v880_v19  ;;  %v1517_v18 = vld [vmem:[%s2540_s8 + $0x2] ss:$0 sm:$0xff] }
 0x37b   : > { %v883_v21 = vpop.permute.xlu1 %882  ;;  %v977_v42 = vpop.permute.xlu0 %976 }
 0x37c   : > { %v888_v23 = vsel %vm765_vm8, %v886_v20, %v883_v21 }
 0x37d   : > { %1566 = vmatmul.mubr.msk.bf16.vlgmr.msra.gmra.mrb[4].mxu0 %vm775_vm9, %v888_v23 }
 0x37e   : > { %1577 = vmatprep.mubr.msk.bf16.mxu0 %vm1973_vm0, %v1972_v0  ;;  %1576 = vmatpush3.bf16.msra.mxu0 %v1708_v24 }
 0x37f   : > { %v979_v45 = vpop.permute.xlu1 %978  ;;  %1587 = vmatprep.subr.bf16.mxu0 %v1972_v0 }
 0x450   : > { %v936_v25 = vpop.f32.mrb[4].mxu0 }
 0x451   : > { %v951_v29 = vadd.f32 %v1504_v22, %v936_v25  ;;  %v1567_v30 = vpop.f32.mrb[5].mxu0 }
 0x452   : > { %v939_v32 = vpop.f32.mrb[6].mxu0  ;;  %v1709_v30 = vld [vmem:[%s2545_s13] sm:$0xff]  }
 0x453   : > { %v953_v34 = vmax.f32 %v951_v29, 0.0  ;;  %v952_v35 = vadd.f32 %v1504_v22, %v939_v32  ;;  %v1568_v36 = vpop.f32.mrb[7].mxu0  ;;  %v1521_v32 = vld [vmem:[#allocation10] ss:$0 sm:$0xff] }
 0x455   : > { %v963_v38 = vmul.f32 %v1506_v31, %v953_v34  ;;  %v954_v39 = vmax.f32 %v952_v35, 0.0 }
 0x457   : > { %v973_v40 = vadd.f32 %v1508_v37, %v963_v38  ;;  %v964_v41 = vmul.f32 %v1506_v31, %v954_v39  ;;  %v1522_v38 = vld [vmem:[%s2544_s12] ss:$0 sm:$0xff] }
 0x459   : > { %v982_v43 = vadd.f32 %v977_v42, %v973_v40  ;;  %v974_v44 = vadd.f32 %v1508_v37, %v964_v41 }
 0x45b   : > { %v983_v46 = vadd.f32 %v979_v45, %v974_v44  ;;  %v975_v47 = vpack.c.bf16 %v974_v44, %v973_v40  ;;  %v984_v48 = vrot.slane %v982_v43, 6  ;;  %v992_v51 = vrot.slane %v982_v43, 2 }
 0x45d   : > { %v985_v49 = vrot.slane %v983_v46, 6  ;;  %v991_v50 = vpack.c.bf16 %v983_v46, %v982_v43  ;;  %v993_v52 = vrot.slane %v983_v46, 2 }
 0x45f   : > { %1000 = vrot.lane.b32.xlu0 %v991_v50, %s1975_s17  ;;  %v994_v53 = vsel %vm745_vm3, %v992_v51, %v993_v52  ;;  %v995_v54 = vsel %vm745_vm3, %v993_v52, %v992_v51  ;;  %v986_v55 = vsel %vm732_vm5, %v984_v48, %v985_v49  ;;  %v987_v56 = vsel %vm732_vm5, %v985_v49, %v984_v48 }
 0x460   : > { %v997_v57 = vsel %vm727_vm4, %v995_v54, 0.0  ;;  %v988_v58 = vsel %vm716_vm6, %v987_v56, 0.0  ;;  %v1711_v54 = vld [vmem:[%s2547_s15 + $0x8] sm:$0xff]  }
 0x461   : > { %v998_v60 = vpack.c.bf16 %v997_v57, %v994_v53  ;;  %v990_v61 = vpack.c.bf16 %v986_v55, %v988_v58  ;;  %v1253_v55 = vld [vmem:[#allocation11] sm:$0x1] }
 0x463   : > { %1003 = vrot.lane.b32.xlu1 %v998_v60, %s1976_s27  ;;  %1098 = vrot.lane.b32.xlu0 %v975_v47, %s1975_s17  ;;  %s1487_s17 = sshll.u32 %s617_s24, 4 }
 0x464   : > { %s619_s18 = scalar_lea.vmem [#allocation13], %s1487_s17 }
 0x465   : > { %s1349_s29 = sshll.u32 %s619_s18, 4  ;;  %s2486_s29 = int_to_ptr.vmem [resolvable:$true] %s1349_s29 }
 0x466   : > { %s1884_s0 = scalar_lea.vmem %s2486_s29, 256  ;;  %p1891_p13 = scmp.lt.s32.totalorder %s2486_s29, %s1889_s16 }
 0x467   : > { %p1885_p4 = scmp.ne.s32.totalorder %s2486_s29, %s1884_s0  ;;  %p1892_p0 = scmp.lt.s32.totalorder %s1890_s26, %s1884_s0 }
 0x469   : > { %p1886_p8 = pnand %p1885_p4, %p2596_p7  ;;  %p1893_p1 = por %p1892_p0, %p1891_p13 }
 0x46b   : > { %p1887_p11 = pneg %p1886_p8 }
 0x46d   : > { %p1894_p6 = pnand %p1893_p1, %p1887_p11 }
 0x4d1   : > { %v1001_v63 = vpop.permute.xlu0 %1000 }
 0x4d2   : > { %v1007_v1 = vsel %vm761_vm7, %v990_v61, %v1001_v63 }
 0x4d5   : > { %v1004_v5 = vpop.permute.xlu1 %1003  ;;  %v1099_v27 = vpop.permute.xlu0 %1098 }
 0x4d6   : > { %v1009_v6 = vsel %vm765_vm8, %v1007_v1, %v1004_v5  ;;  %v1105_v28 = vsel %vm761_vm7, %v852_v4, %v1099_v27  ;;  %v1317_v5 = vld [vmem:[%s2593_s22] sm:$0x1] }
 0x4d7   : > { %1572 = vmatmul.mubr.msk.bf16.vlgmr.msra.gmra.mrb[4].mxu1 %vm775_vm9, %v1009_v6 }
 0x4d8   : > { %1583 = vmatprep.mubr.msk.bf16.mxu1 %vm1973_vm0, %v1972_v0  ;;  %1582 = vmatpush3.bf16.msra.mxu1 %v1709_v30 }
 0x5aa   : > { %v1057_v8 = vpop.f32.mrb[4].mxu1 }
 0x5ab   : > { %v1072_v9 = vadd.f32 %v1513_v33, %v1057_v8  ;;  %v1573_v10 = vpop.f32.mrb[5].mxu1 }
 0x5ac   : > { %v1060_v12 = vpop.f32.mrb[6].mxu1 }
 0x5ad   : > { %v1074_v13 = vmax.f32 %v1072_v9, 0.0  ;;  %v1073_v14 = vadd.f32 %v1513_v33, %v1060_v12  ;;  %v1574_v15 = vpop.f32.mrb[7].mxu1 }
 0x5af   : > { %v1084_v16 = vmul.f32 %v1515_v11, %v1074_v13  ;;  %v1075_v17 = vmax.f32 %v1073_v14, 0.0  ;;  %v1327_v13 = vsub.s32 0, %v2311_v7 }
 0x5b1   : > { %v1085_v19 = vmul.f32 %v1515_v11, %v1075_v17  ;;  %v1094_v20 = vadd.f32 %v1517_v18, %v1084_v16 }
 0x5b3   : > { %v1095_v21 = vadd.f32 %v1517_v18, %v1085_v19 }
 0x5b5   : > { %v1096_v23 = vpack.c.bf16 %v1095_v21, %v1094_v20 }
 0x5b7   : > { %1101 = vrot.lane.b32.xlu1 %v1096_v23, %s1976_s27 }
 0x629   : > { %v1102_v22 = vpop.permute.xlu1 %1101 }
 0x62a   : > { %v1107_v25 = vsel %vm765_vm8, %v1105_v28, %v1102_v22 }
 0x62b   : > { %v1109_v29 = vsel %vm775_vm9, %v1107_v25, %v2332_v26 }
 0x62c   : > { %1578 = vmatmul.mubr.msk.bf16.vlgmr.msra.gmra.mrb[8].mxu0 %vm637_vm1, %v1109_v29 }
 0x62d   : > { %1591 = vmatprep.mubr.msk.bf16.mxu0 %vm1973_vm0, %v1972_v0  ;;  %1588 = vmatpush3.bf16.msra.mxu0 %v1710_v59 }
 0x62e   : > { %1589 = vmatprep.subr.bf16.mxu0 %v1972_v0 }
 0x631   : > { %1590 = vmatpush3.bf16.msra.mxu0 %v1711_v54 }
 0x6ff   : > { %v1154_v4 = vpop.f32.mrb[8].mxu0 }
 0x700   : > { %v1168_v26 = vadd.f32 %v1520_v62, %v1154_v4  ;;  %v1579_v31 = vpop.f32.mrb[9].mxu0 }
 0x701   : > { %v1157_v34 = vpop.f32.mrb[10].mxu0 }
 0x702   : > { %v1170_v35 = vmax.f32 %v1168_v26, 0.0  ;;  %v1169_v36 = vadd.f32 %v1520_v62, %v1157_v34  ;;  %v1580_v37 = vpop.f32.mrb[11].mxu0 }
 0x704   : > { %v1179_v39 = vmul.f32 %v1521_v32, %v1170_v35  ;;  %v1171_v40 = vmax.f32 %v1169_v36, 0.0 }
 0x706   : > { %v1188_v41 = vadd.f32 %v1522_v38, %v1179_v39  ;;  %v1180_v42 = vmul.f32 %v1521_v32, %v1171_v40 }
 0x708   : > { %v1189_v43 = vadd.f32 %v1522_v38, %v1180_v42  ;;  %v1190_v0 = vsel %vm637_vm1, %v1188_v41, 0.0 }
 0x70a   : > { %v1191_v44 = vsel %vm637_vm1, %v1189_v43, 0.0 }
 0x70b   : > { %v1192_v45 = vadd.f32 %v1191_v44, %v1190_v0 }
 0x70d   : > { %v1193_v46 = vrot.slane %v1192_v45, 4 }
 0x70f   : > { %v1194_v47 = vadd.f32 %v1193_v46, %v1192_v45 }
 0x711   : > { %v1195_v48 = vrot.slane %v1194_v47, 2 }
 0x713   : > { %v1196_v49 = vadd.f32 %v1195_v48, %v1194_v47 }
 0x715   : > { %v1197_v50 = vrot.slane %v1196_v49, 1 }
 0x717   : > { %v1198_v51 = vadd.f32 %v1197_v50, %v1196_v49 }
 0x719   : > { %v1200_v52 = vmul.f32 0.0625, %v1198_v51 }
 0x71b   : > { %v1201_v53 = vpack.c.bf16 %v1200_v52, %v1200_v52 }
 0x71d   : > { %1584 = vmatmul.mubr.msk.bf16.vlgmr.msra.gmra.mrb[8].mxu1 %vm637_vm1, %v1201_v53 }
 0x7f0   : > { %v1247_v56 = vpop.f32.mrb[8].mxu1 }
 0x7f1   : > { %v1254_v57 = vadd.f32 %v1253_v55, %v1247_v56  ;;  %v1585_v58 = vpop.f32.mrb[9].mxu1 }
 0x7f2   : > { %v1250_v60 = vpop.f32.mrb[10].mxu1 }
 0x7f3   : > { %v1255_v61 = vmax.f32 %v1254_v57, 0.0  ;;  %v1586_v63 = vpop.f32.mrb[11].mxu1 }
 0x7f5   : > { %v1256_v1 = vpack.c.bf16 %v1255_v61, %v1255_v61 }
 0x7f7   : > { %1592 = vmatmul.mubr.msk.bf16.vlgmr.msra.gmra.mrb[12].mxu0 %vm1273_vm10, %v1256_v1 }
 0x8ca   : > { %v1311_v6 = vpop.f32.mrb[12].mxu0 }
 0x8cb   : > { %v1318_v24 = vadd.f32 %v1317_v5, %v1311_v6  ;;  %v1593_v33 = vpop.f32.mrb[13].mxu0 }
 0x8cc   : > { %v1314_v8 = vpop.f32.mrb[14].mxu0 }
 0x8cd   : > { %v1528_v9 = vmul.f32 -1.442695, %v1318_v24  ;;  %v1594_v10 = vpop.f32.mrb[15].mxu0 }
 0x8cf   : > { %1712 = vpow2.f32 %v1528_v9 }
 0x8d9   : > { %v1713_v11 = vpop.eup %1712 }
 0x8da   : > { %v1322_v12 = vadd.f32 1.0, %v1713_v11 }
 0x8dc   : > { %1714 = vrcp.f32 %v1322_v12 }
 0x8e6   : > { %v1715_v14 = vpop.eup %1714 }
 0x8e7   : > { %v1328_v15 = vrot.slane %v1715_v14, %v1327_v13 }
 0x8e9   : > { %v1329_v16 = vmul.f32 %v1328_v15, %v1188_v41  ;;  %v1330_v17 = vmul.f32 %v1328_v15, %v1189_v43 }
 0x8eb   : > { %v1331_v18 = vadd.f32 %v1329_v16, %v2301_v2  ;;  %v1332_v19 = vadd.f32 %v1330_v17, %v2303_v3 }
 0x8ed   : > { %1333 = vst.msk [vmem:[%s619_s18] sm:$0xff] %vm637_vm1, %v1331_v18  ;;  %1334 = vst.msk [vmem:[%s619_s18 + $0x8] sm:$0xff] %vm637_vm1, %v1332_v19 }
 0x8ee   : > { %1897 = shalt.err (!%p1894_p6)
}
 0x8ef   : > { %s1898_s1 = scalar_lea.hbm %s2482_s19, 256  ;;  %s1902_s17 = scalar_lea.hbm %s2595_s3, 512 }
 0x8f0   : > { %p1899_p5 = scmp.ne.s32.totalorder %s2482_s19, %s1898_s1  ;;  %p1903_p10 = scmp.lt.u32.totalorder %s2482_s19, %s2595_s3 }
 0x8f1   : > { %p1904_p2 = scmp.lt.u32.totalorder %s1902_s17, %s1898_s1  ;;  %p1906_p4 = scmp.lt.u32.totalorder %s1898_s1, %s2482_s19 }
 0x8f2   : > { %p1900_p9 = pnand %p1899_p5, %p2596_p7 }
 0x8f3   : > { %p1905_p3 = por %p1904_p2, %p1903_p10 }
 0x8f4   : > { %p1901_p12 = pneg %p1900_p9 }
 0x8f5   : > { %p1907_p8 = por %p1906_p4, %p1905_p3 }
 0x8f7   : > { %p1908_p11 = pnand %p1907_p8, %p1901_p12 }
 0x8f9   : > { %1911 = shalt.err (!%p1908_p11)
}
 0x8fa   : > { %s1979_s30 = smov 128  }
 0x8fb   : > { %1619 = dma.vmem_to_hbm [thread:$0]  (%p2596_p7), %s2486_s29, 256, %s2482_s19, %s2490_s28, %s1979_s30, %s1979_s30, %s1976_s27  }
 0x8fc PF: > { %s2597_s2 = sld [smem:[#allocation21_spill]]  ;;  %s2598_s0 = sld [smem:[#allocation19_spill]] }
 0x8fd   : > { %s2599_s23 = sld [smem:[#allocation25_spill]] }
 0x902   : > { %p1656_p13 = scmp.ge.s32.totalorder %s2597_s2, 2  ;;  %s1364_s16 = sand.u32 1, %s2598_s0  }
 0x903   : > { %p2600_p0 = scmp.ne.s32.totalorder %s2599_s23, 0  ;;  %s1365_s26 = scalar_lea.sflag [#allocation4], %s1364_s16 }
 0x905   : > { %p1641_p1 = pnand %p1656_p13, %p2600_p0 }
 0x907   : > { %1945 = dma.done.wait (!%p1641_p1), %s1365_s26, 256  }
 0x908   : > { %1947 = vsyncadd (!%p1641_p1), %s1365_s26, 4294967040  ;;  %s2601_s27 = sld [smem:[#allocation22_spill]]  ;;  %s2602_s1 = sld [smem:[#allocation20_spill]] }
 0x909   : > { %s2603_s26 = sld [smem:[#allocation23_spill]]  ;;  %s2604_s24 = smov %s1954_s25 }
 0x90e   : > { %p31_p6 = scmp.ge.s32.totalorder %s2601_s27, 4   ;;  %s2605_s25 = smov %s2602_s1 }
 0x910   :  { %33 = sbr.rel (!%p31_p6) target bundleno = 14 (0xe), region = 156 }
 0x917   :  { %1370 = vsyncpa [#allocation3], 1 }
 0x918   :  { %1372 = vsyncpa [#allocation3 + $0x1], 1 }
 0x919   :  { %1373 = vsyncpa [#allocation6], 1 }
 0x91a   :  { %1374 = vsyncpa [#allocation9], 1 }
 0x91b   :  { %1375 = vsyncpa [#allocation12], 1 }
 0x91c   :  { %1376 = vsyncpa [#allocation4], 1 }
 0x91d   :  { %1378 = vsyncpa [#allocation4 + $0x1], 1 }

// kernel: _forward_impl.1
= control target key start
LH: loop header
LB: loop body
LE: loop exit
PB: predicated region body
PF: predicated region fallthrough
CT: control target
= control target key end

     0   :  { %s2532_s0 = inlined_call_operand.vmem [shape: f32[2,16,16], index: 0, kind: input, shape index: {}]   ;;  %s2533_s1 = inlined_call_operand.vmem [shape: bf16[16,16], index: 1, kind: input, shape index: {}]   ;;  %s2534_s2 = inlined_call_operand.hbm [shape: f32[1,16], index: 2, kind: input, shape index: {}]   ;;  %s2535_s3 = inlined_call_operand.hbm [shape: f32[1,16], index: 3, kind: input, shape index: {}]   ;;  %s2536_s4 = inlined_call_operand.vmem [shape: f32[1,16], index: 4, kind: input, shape index: {}]   ;;  %s2537_s5 = inlined_call_operand.vmem [shape: bf16[3,12,4], index: 5, kind: input, shape index: {}]   ;;  %s2538_s6 = inlined_call_operand.hbm [shape: f32[3,1,4], index: 6, kind: input, shape index: {}]   ;;  %s2539_s7 = inlined_call_operand.vmem [shape: f32[3,1,4], index: 7, kind: input, shape index: {}]   ;;  %s2540_s8 = inlined_call_operand.vmem [shape: f32[3,1,4], index: 8, kind: input, shape index: {}]   ;;  %s2541_s9 = inlined_call_operand.vmem [shape: bf16[16,16], index: 9, kind: input, shape index: {}]   ;;  %s2542_s10 = inlined_call_operand.hbm [shape: f32[1,16], index: 10, kind: input, shape index: {}]   ;;  %s2543_s11 = inlined_call_operand.hbm [shape: f32[1,16], index: 11, kind: input, shape index: {}]   ;;  %s2544_s12 = inlined_call_operand.vmem [shape: f32[1,16], index: 12, kind: input, shape index: {}]   ;;  %s2545_s13 = inlined_call_operand.vmem [shape: bf16[16,32], index: 13, kind: input, shape index: {}]   ;;  %s2546_s14 = inlined_call_operand.hbm [shape: f32[1,32], index: 14, kind: input, shape index: {}]   ;;  %s2547_s15 = inlined_call_operand.vmem [shape: bf16[32,16], index: 15, kind: input, shape index: {}]   ;;  %s2548_s16 = inlined_call_operand.vmem [shape: f32[1,16], index: 16, kind: input, shape index: {}]   ;;  %s2549_s17 = inlined_call_operand.hbm [shape: f32[2,16,16], index: 17, kind: output, shape index: {}]  }
   0x1   :  { %2562 = sst [smem:[#allocation26_spill]] %s2532_s0 }
   0x2   :  { %2563 = sst [smem:[#allocation27_spill]] %s2533_s1 }
   0x3   :  { %2564 = sst [smem:[#allocation28_spill]] %s2534_s2 }
   0x4   :  { %2565 = sst [smem:[#allocation29_spill]] %s2535_s3 }
   0x5   :  { %2566 = sst [smem:[#allocation30_spill]] %s2548_s16 }
   0x6   :  { %2567 = sst [smem:[#allocation31_spill]] %s2549_s17 }
   0x7   :  { %22 = vsyncpa [#allocation3], 0 }
   0x8   :  { %23 = vsyncpa [#allocation6], 0 }
   0x9   :  { %24 = vsyncpa [#allocation9], 0 }
   0xa   :  { %25 = vsyncpa [#allocation12], 0 }
   0xb   :  { %26 = vsyncpa [#allocation4], 0 }
   0xc   :  { %28 = vsyncpa [#allocation4 + $0x1], 0  ;;  %s2070_s24 = smov 0   ;;  %s2072_s25 = smov 0  }
   0xd   :  { %s2074_s26 = smov 0   ;;  %s2076_s27 = smov 0  }
   0xe LB: > { %2568 = sst [smem:[#allocation19_spill]] %s1950_s24  ;;  %s2091_s28 = sadd.s32 4294967295, %s1962_s27   ;;  %s1962_s27 = sphi %s2076_s27, %s2601_s27   ;;  %s1958_s26 = sphi %s2074_s26, %s2603_s26   ;;  %s1954_s25 = sphi %s2072_s25, %s2605_s25   ;;  %s1950_s24 = sphi %s2070_s24, %s2604_s24  }
   0xf   : > { %2569 = sst [smem:[#allocation20_spill]] %s1958_s26  ;;  %s1471_s29 = sadd.s32 4294967294, %s1962_s27  }
  0x10   : > { %2570 = sst [smem:[#allocation21_spill]] %s1962_s27  ;;  %s2095_s0 = sadd.s32 1, %s1962_s27  }
  0x11   : > { %2571 = sst [smem:[#allocation22_spill]] %s2095_s0  ;;  %s403_s30 = sadd.s32 1, %s1958_s26 }
  0x12   : > { %s400_s18 = ssub.s32 %s1962_s27, %s2095_s0  ;;  %p413_p0 = scmp.ne.s32.totalorder %s1958_s26, %s1954_s25 }
  0x13   : > { %p401_p1 = scmp.eq.s32.totalorder %s400_s18, 0  ;;  %p414_p2 = scmp.eq.s32.totalorder %s2091_s28, 1 }
  0x14   : > { %p419_p3 = scmp.ne.s32.totalorder %s1954_s25, %s1950_s24  ;;  %p420_p4 = scmp.eq.s32.totalorder %s1471_s29, 1 }
  0x15   : > { %s2106_s19 = scalar_select %p401_p1, %s1958_s26, %s403_s30  }
  0x16   : > { %p2108_p5 = por %p414_p2, %p413_p0  ;;  %p2112_p6 = por %p420_p4, %p419_p3 }
  0x17   : > { %2572 = sst [smem:[#allocation23_spill]] %s2106_s19  ;;  %p1472_p7 = scmp.ge.s32.totalorder %s1962_s27, 1 }
  0x18   : > { %s2573_s1 = scalar_select %p2108_p5, 1, 0 }
  0x19   : > { %s2575_s20 = scalar_select %p2112_p6, 1, 0 }
  0x1a   : > { %2574 = sst [smem:[#allocation24_spill]] %s2573_s1  ;;  %p427_p8 = scmp.lt.s32.totalorder %s1962_s27, 3 }
  0x1b   : > { %2576 = sst [smem:[#allocation25_spill]] %s2575_s20  ;;  %p2557_p9 = scmp.eq.s32.totalorder %s2091_s28, 0 }
  0x1c   : > { %p2119_p10 = pnand %p1472_p7, %p427_p8  ;;  %s1964_s22 = smov [#allocation5]  }
  0x1d   : > { %s454_s23 = sshll.u32 %s1964_s22, 4  ;;  %s1965_s29 = smov [#allocation8]   ;;  %s455_s23 = int_to_ptr.vmem [resolvable:$true] %s454_s23 }
  0x1e   : > { %s2577_s21 = scalar_select %p2119_p10, 1, 0 }
  0x1f   : > { %p1621_p11 = pneg %p2119_p10  ;;  %s493_s30 = sshll.u32 %s1965_s29, 4  ;;  %s2131_s30 = int_to_ptr.vmem [resolvable:$true] %s493_s30 }
  0x20   : > { %s1966_s19 = smov [#allocation2]   ;;  %s2579_s3 = sld [smem:[#allocation29_spill]] }
  0x21   : > { %p2127_p12 = pnand %p2557_p9, %p1621_p11  ;;  %s443_s26 = sshll.u32 %s1966_s19, 4  ;;  %s2133_s26 = int_to_ptr.vmem [resolvable:$true] %s443_s26 }
  0x23   : > { %p2143_p0 = pneg %p2127_p12 }
  0x26   : > { %s1716_s22 = scalar_lea.hbm %s2579_s3, 16 }
  0x27   : > { %p1717_p13 = scmp.ne.s32.totalorder %s2579_s3, %s1716_s22  ;;  %p1723_p3 = scmp.lt.u32.totalorder %s1716_s22, %s2579_s3 }
  0x29   : > { %p1719_p1 = pnand %p2143_p0, %p1717_p13 }
  0x2b   : > { %p1720_p2 = pneg %p1719_p1 }
  0x2d   : > { %p1725_p4 = pnand %p1723_p3, %p1720_p2 }
  0x2f   : > { %1728 = shalt.err (!%p1725_p4)
}
  0x30   : > { %s1729_s0 = scalar_lea.vmem %s455_s23, 16  ;;  %s1736_s24 = scalar_lea.vmem %s455_s23, 32 }
  0x31   : > { %p1730_p7 = scmp.ne.s32.totalorder %s455_s23, %s1729_s0  ;;  %p1737_p9 = scmp.lt.s32.totalorder %s455_s23, %s455_s23 }
  0x32   : > { %p1738_p6 = scmp.lt.s32.totalorder %s1736_s24, %s1729_s0 }
  0x33   : > { %p1732_p8 = pnand %p1730_p7, %p2143_p0 }
  0x34   : > { %p1739_p5 = por %p1738_p6, %p1737_p9 }
  0x35   : > { %p1733_p11 = pneg %p1732_p8 }
  0x37   : > { %p1740_p10 = pnand %p1739_p5, %p1733_p11 }
  0x39   : > { %1743 = shalt.err (!%p1740_p10)
}
  0x3a   : > { %1627 = dma.hbm_to_vmem [thread:$0]  (!%p2127_p12), %s2579_s3, 16, %s455_s23, [#allocation6]  }
  0x3b   : > { %s1744_s19 = scalar_lea.hbm %s2542_s10, 16 }
  0x3c   : > { %p1745_p13 = scmp.ne.s32.totalorder %s2542_s10, %s1744_s19  ;;  %p1751_p5 = scmp.lt.u32.totalorder %s1744_s19, %s2542_s10 }
  0x3e   : > { %p1747_p1 = pnand %p1745_p13, %p2143_p0 }
  0x40   : > { %p1748_p6 = pneg %p1747_p1 }
  0x42   : > { %p1753_p9 = pnand %p1751_p5, %p1748_p6 }
  0x44   : > { %1756 = shalt.err (!%p1753_p9)
}
  0x45   : > { %s1757_s23 = scalar_lea.vmem %s2131_s30, 16  ;;  %s1764_s16 = scalar_lea.vmem %s2131_s30, 32 }
  0x46   : > { %p1758_p10 = scmp.ne.s32.totalorder %s2131_s30, %s1757_s23  ;;  %p1765_p4 = scmp.lt.s32.totalorder %s2131_s30, %s2131_s30 }
  0x47   : > { %p1766_p7 = scmp.lt.s32.totalorder %s1764_s16, %s1757_s23 }
  0x48   : > { %p1760_p2 = pnand %p1758_p10, %p2143_p0 }
  0x49   : > { %p1767_p8 = por %p1766_p7, %p1765_p4 }
  0x4a   : > { %p1761_p3 = pneg %p1760_p2 }
  0x4c   : > { %p1768_p11 = pnand %p1767_p8, %p1761_p3 }
  0x4e   : > { %1771 = shalt.err (!%p1768_p11)
}
  0x4f   : > { %1633 = dma.hbm_to_vmem [thread:$0]  (!%p2127_p12), %s2542_s10, 16, %s2131_s30, [#allocation9]  }
  0x50   : > { %s2581_s2 = sld [smem:[#allocation28_spill]] }
  0x56   : > { %s1772_s22 = scalar_lea.hbm %s2581_s2, 16 }
  0x57   : > { %p1773_p13 = scmp.ne.s32.totalorder %s2581_s2, %s1772_s22  ;;  %p1779_p5 = scmp.lt.u32.totalorder %s1772_s22, %s2581_s2 }
  0x59   : > { %p1775_p1 = pnand %p1773_p13, %p2143_p0 }
  0x5b   : > { %p1776_p6 = pneg %p1775_p1 }
  0x5d   : > { %p1781_p9 = pnand %p1779_p5, %p1776_p6 }
  0x5f   : > { %1784 = shalt.err (!%p1781_p9)
}
  0x60   : > { %s1785_s30 = scalar_lea.vmem %s2133_s26, 16  ;;  %s1792_s16 = scalar_lea.vmem %s2133_s26, 32 }
  0x61   : > { %p1786_p10 = scmp.ne.s32.totalorder %s2133_s26, %s1785_s30  ;;  %p1793_p4 = scmp.lt.s32.totalorder %s2133_s26, %s2133_s26 }
  0x62   : > { %p1794_p7 = scmp.lt.s32.totalorder %s1792_s16, %s1785_s30 }
  0x63   : > { %p1788_p2 = pnand %p1786_p10, %p2143_p0 }
  0x64   : > { %p1795_p8 = por %p1794_p7, %p1793_p4 }
  0x65   : > { %p1789_p3 = pneg %p1788_p2 }
  0x67   : > { %p1796_p11 = pnand %p1795_p8, %p1789_p3 }
  0x69   : > { %1799 = shalt.err (!%p1796_p11)
}
  0x6a   : > { %1624 = dma.hbm_to_vmem [thread:$0]  (!%p2127_p12), %s2581_s2, 16, %s2133_s26, [#allocation3]  }
  0x6b   : > { %s1967_s20 = smov [#allocation7]   ;;  %s1800_s0 = scalar_lea.hbm %s2538_s6, 48 }
  0x6c   : > { %s470_s17 = sshll.u32 %s1967_s20, 4  ;;  %p1801_p13 = scmp.ne.s32.totalorder %s2538_s6, %s1800_s0  ;;  %s471_s17 = int_to_ptr.vmem [resolvable:$true] %s470_s17 }
  0x6d   : > { %p1807_p5 = scmp.lt.u32.totalorder %s1800_s0, %s2538_s6 }
  0x6e   : > { %p1803_p1 = pnand %p1801_p13, %p2143_p0 }
  0x70   : > { %p1804_p6 = pneg %p1803_p1 }
  0x72   : > { %p1809_p9 = pnand %p1807_p5, %p1804_p6 }
  0x74   : > { %1812 = shalt.err (!%p1809_p9)
}
  0x75   : > { %s1813_s26 = scalar_lea.vmem %s471_s17, 48  ;;  %s1820_s1 = scalar_lea.vmem %s471_s17, 64 }
  0x76   : > { %p1814_p10 = scmp.ne.s32.totalorder %s471_s17, %s1813_s26  ;;  %p1821_p4 = scmp.lt.s32.totalorder %s471_s17, %s471_s17 }
  0x77   : > { %p1822_p7 = scmp.lt.s32.totalorder %s1820_s1, %s1813_s26 }
  0x78   : > { %p1816_p2 = pnand %p1814_p10, %p2143_p0 }
  0x79   : > { %p1823_p8 = por %p1822_p7, %p1821_p4 }
  0x7a   : > { %p1817_p3 = pneg %p1816_p2 }
  0x7c   : > { %p1824_p11 = pnand %p1823_p8, %p1817_p3 }
  0x7e   : > { %1827 = shalt.err (!%p1824_p11)
}
  0x7f   : > { %s1968_s27 = smov 16   ;;  %s1969_s20 = smov 1  }
  0x80   : > { %1630 = dma.hbm_to_vmem [thread:$0]  (!%p2127_p12), %s2538_s6, 48, %s471_s17, [#allocation6], %s1968_s27, %s1968_s27, %s1969_s20  }
  0x81   : > { %s1970_s0 = smov [#allocation10]   ;;  %s1971_s23 = smov [#allocation11]  }
  0x82   : > { %s504_s24 = sshll.u32 %s1970_s0, 4  ;;  %s521_s30 = sshll.u32 %s1971_s23, 4  ;;  %s505_s24 = int_to_ptr.vmem [resolvable:$true] %s504_s24  ;;  %s2225_s30 = int_to_ptr.vmem [resolvable:$true] %s521_s30 }
  0x83   : > { %s1828_s1 = scalar_lea.hbm %s2543_s11, 16 }
  0x84   : > { %p1829_p13 = scmp.ne.s32.totalorder %s2543_s11, %s1828_s1  ;;  %p1835_p5 = scmp.lt.u32.totalorder %s1828_s1, %s2543_s11 }
  0x86   : > { %p1831_p1 = pnand %p1829_p13, %p2143_p0 }
  0x88   : > { %p1832_p6 = pneg %p1831_p1 }
  0x8a   : > { %p1837_p9 = pnand %p1835_p5, %p1832_p6 }
  0x8c   : > { %1840 = shalt.err (!%p1837_p9)
}
  0x8d   : > { %s1841_s27 = scalar_lea.vmem %s505_s24, 16  ;;  %s1848_s20 = scalar_lea.vmem %s505_s24, 32 }
  0x8e   : > { %p1842_p10 = scmp.ne.s32.totalorder %s505_s24, %s1841_s27  ;;  %p1849_p4 = scmp.lt.s32.totalorder %s505_s24, %s505_s24 }
  0x8f   : > { %p1850_p7 = scmp.lt.s32.totalorder %s1848_s20, %s1841_s27 }
  0x90   : > { %p1844_p2 = pnand %p1842_p10, %p2143_p0 }
  0x91   : > { %p1851_p8 = por %p1850_p7, %p1849_p4 }
  0x92   : > { %p1845_p3 = pneg %p1844_p2 }
  0x94   : > { %p1852_p11 = pnand %p1851_p8, %p1845_p3 }
  0x96   : > { %1855 = shalt.err (!%p1852_p11)
}
  0x97   : > { %1636 = dma.hbm_to_vmem [thread:$0]  (!%p2127_p12), %s2543_s11, 16, %s505_s24, [#allocation9]  }
  0x98   : > { %s1856_s23 = scalar_lea.hbm %s2546_s14, 16 }
  0x99   : > { %p1857_p13 = scmp.ne.s32.totalorder %s2546_s14, %s1856_s23  ;;  %p1863_p5 = scmp.lt.u32.totalorder %s1856_s23, %s2546_s14 }
  0x9b   : > { %p1859_p1 = pnand %p1857_p13, %p2143_p0 }
  0x9d   : > { %p1860_p6 = pneg %p1859_p1 }
  0x9f   : > { %p1865_p9 = pnand %p1863_p5, %p1860_p6 }
  0xa1   : > { %1868 = shalt.err (!%p1865_p9)
}
  0xa2   : > { %s1869_s24 = scalar_lea.vmem %s2225_s30, 16  ;;  %s1876_s17 = scalar_lea.vmem %s2225_s30, 32 }
  0xa3   : > { %p1870_p10 = scmp.ne.s32.totalorder %s2225_s30, %s1869_s24  ;;  %p1877_p4 = scmp.lt.s32.totalorder %s2225_s30, %s2225_s30 }
  0xa4   : > { %p1878_p7 = scmp.lt.s32.totalorder %s1876_s17, %s1869_s24 }
  0xa5   : > { %p1872_p2 = pnand %p1870_p10, %p2143_p0 }
  0xa6   : > { %p1879_p8 = por %p1878_p7, %p1877_p4 }
  0xa7   : > { %p1873_p3 = pneg %p1872_p2 }
  0xa9   : > { %p1880_p11 = pnand %p1879_p8, %p1873_p3 }
  0xab   : > { %1883 = shalt.err (!%p1880_p11)
}
  0xac   : > { %1639 = dma.hbm_to_vmem [thread:$0]  (!%p2127_p12), %s2546_s14, 16, %s2225_s30, [#allocation12]  }
  0xad   : > { %p2582_p13 = scmp.ne.s32.totalorder %s2577_s21, 0 }
  0xae   : > { %p2583_p0 = scmp.eq.s32.totalorder (!%p2582_p13), %s2091_s28, 0 }
  0xaf   : > { %548 = sbr.rel (%p2582_p13) target bundleno = 2300 (0x8fc), region = 88 }
  0xb6   : > { %1929 = dma.done.wait (%p2583_p0), [#allocation3], 16   ;;  %p2584_p1 = pmov %p2583_p0 }
  0xb7   : > { %p2585_p6 = pmov %p2583_p0 }
  0xb8   : > { %1931 = vsyncadd (%p2584_p1), [#allocation3], 4294967280 }
  0xb9   : > { %1933 = dma.done.wait (%p2585_p6), [#allocation6], 64   ;;  %p2586_p5 = pmov %p2583_p0 }
  0xba   : > { %p2587_p9 = pmov %p2583_p0 }
  0xbb   : > { %1935 = vsyncadd (%p2586_p5), [#allocation6], 4294967232 }
  0xbc   : > { %1937 = dma.done.wait (%p2587_p9), [#allocation9], 32   ;;  %p2588_p12 = pmov %p2583_p0 }
  0xbd   : > { %p2589_p10 = pmov %p2583_p0 }
  0xbe   : > { %1939 = vsyncadd (%p2588_p12), [#allocation9], 4294967264 }
  0xbf   : > { %1941 = dma.done.wait (%p2589_p10), [#allocation12], 16   ;;  %p2590_p2 = pmov %p2583_p0 }
  0xc0   : > { %p620_p3 = scmp.lt.s32.totalorder %s2091_s28, 1  ;;  %v1972_v0 = vmov 0.0   ;;  %vm1973_vm0 = vmmov 0   ;;  %s2591_s2 = sld [smem:[#allocation26_spill]]  ;;  %vm637_vm1 = vcmask 130048   ;;  %v711_v5 = vlaneseq }
  0xc1   : > { %1943 = vsyncadd (%p2590_p2), [#allocation12], 4294967280  ;;  %1551 = vmatprep.subr.bf16.mxu0 %v1972_v0  ;;  %1553 = vmatprep.mubr.msk.bf16.mxu0 %vm1973_vm0, %v1972_v0  ;;  %s2592_s23 = sld [smem:[#allocation27_spill]]  ;;  %v1492_v6 = vld [vmem:[#allocation2] ss:$0 sm:$0xff]  ;;  %vm778_vm2 = vcmask 1045504  }
  0xc2   : > { %s621_s21 = scalar_select %p620_p3, %s2091_s28, 1  ;;  %1557 = vmatprep.subr.bf16.mxu1 %v1972_v0  ;;  %1559 = vmatprep.mubr.msk.bf16.mxu1 %vm1973_vm0, %v1972_v0  ;;  %v2311_v7 = vshrl.u32 %v711_v5, 7  ;;  %v1705_v9 = vld [vmem:[%s2537_s5] sm:$0x3f]   ;;  %vm761_vm7 = vcmask 31744   ;;  %vm765_vm8 = vcmask 64512  }
  0xc3   : > { %v1493_v12 = vld [vmem:[#allocation5] ss:$0 sm:$0xff]  ;;  %v780_v14 = vsel %vm778_vm2, %v1705_v9, 0  ;;  %v1494_v19 = vld [vmem:[%s2536_s4] ss:$0 sm:$0xff]  ;;  %s1974_s24 = smov 124  }
  0xc4   : > { %s1534_s18 = sshll.u32 %s621_s21, 4  ;;  %v713_v18 = vadd.s32 8, %v2311_v7  ;;  %1558 = vmatpush3.bf16.msra.mxu1 %v780_v14  ;;  %vm745_vm3 = vcmp.lt.s32.totalorder %v2311_v7, 6  ;;  %s1975_s17 = smov 4   ;;  %v2348_v33 = vadd.s32 4294967294, %v2311_v7  ;;  %vm732_vm5 = vcmp.lt.s32.totalorder %v2311_v7, 2 }
  0xc5   : > { %1569 = vmatprep.subr.bf16.mxu1 %v1972_v0  ;;  %s1976_s27 = smov 8   ;;  %vm775_vm9 = vcmask 97280   ;;  %v1706_v44 = vld [vmem:[%s2537_s5 + $0x8] sm:$0x3f]   ;;  %v1497_v46 = vld [vmem:[#allocation7] ss:$0 sm:$0xff] }
  0xc6   : > { %s624_s3 = scalar_lea.vmem %s2591_s2, %s1534_s18  ;;  %v2324_v24 = vadd.s32 2, %v713_v18  ;;  %vm716_vm6 = vcmp.ge.s32.totalorder %v2348_v33, 0  ;;  %v900_v45 = vsel %vm778_vm2, %v1706_v44, 0  ;;  %v1498_v50 = vld [vmem:[%s2539_s7] ss:$0 sm:$0xff]  ;;  %vm1273_vm10 = vcmask 261120  }
  0xc7   : > { %v1704_v1 = vld [vmem:[%s2592_s23] sm:$0xff]   ;;  %v2303_v3 = vld [vmem:[%s624_s3 + $0x8] sm:$0xff]  ;;  %s2593_s22 = sld [smem:[#allocation30_spill]]  ;;  %s2594_s20 = sld [smem:[#allocation24_spill]] }
  0xc8   : > { %v2301_v2 = vld [vmem:[%s624_s3] sm:$0xff]  ;;  %1552 = vmatpush3.bf16.msra.mxu0 %v1704_v1  ;;  %vm727_vm4 = vcmp.lt.s32.totalorder %v2324_v24, 16  ;;  %s1977_s3 = smov 120   ;;  %s1535_s21 = sshll.u32 %s2091_s28, 8 }
  0xc9   : > { %v628_v4 = vpack.c.bf16 %v2303_v3, %v2301_v2  ;;  %1563 = vmatprep.subr.bf16.mxu0 %v1972_v0  ;;  %v1499_v56 = vld [vmem:[%s2540_s8] ss:$0 sm:$0xff]  ;;  %v1513_v33 = vld [vmem:[#allocation7 + $0x2] ss:$0 sm:$0xff]  ;;  %s1978_s23 = smov [#allocation13]  }
  0xca   : > { %v1708_v24 = vld [vmem:[%s2541_s9] sm:$0xff]   ;;  %s1888_s16 = sshll.u32 %s1978_s23, 4  ;;  %s1889_s16 = int_to_ptr.vmem [resolvable:$false] %s1888_s16 }
  0xcb   : > { %1554 = vmatmul.mubr.msk.bf16.vlgmr.msra.gmra.mrb[0].mxu0 %vm637_vm1, %v628_v4  ;;  %s1890_s26 = scalar_lea.vmem %s1889_s16, 512 }
  0xcc   : > { %1565 = vmatprep.mubr.msk.bf16.mxu0 %vm1973_vm0, %v1972_v0  ;;  %1564 = vmatpush3.bf16.msra.mxu0 %v900_v45 }
  0xcd   : > { %1575 = vmatprep.subr.bf16.mxu0 %v1972_v0  ;;  %p2596_p7 = scmp.ne.s32.totalorder %s2594_s20, 0 }
 0x19e   : > { %v675_v8 = vpop.f32.mrb[0].mxu0 }
 0x19f   : > { %v689_v10 = vadd.f32 %v1492_v6, %v675_v8  ;;  %v1555_v11 = vpop.f32.mrb[1].mxu0 }
 0x1a0   : > { %v678_v13 = vpop.f32.mrb[2].mxu0 }
 0x1a1   : > { %v691_v15 = vmax.f32 %v689_v10, 0.0  ;;  %v690_v16 = vadd.f32 %v1492_v6, %v678_v13  ;;  %v1556_v17 = vpop.f32.mrb[3].mxu0 }
 0x1a3   : > { %v700_v20 = vmul.f32 %v1493_v12, %v691_v15  ;;  %v692_v21 = vmax.f32 %v690_v16, 0.0 }
 0x1a5   : > { %v2322_v22 = vadd.f32 %v1494_v19, %v700_v20  ;;  %v701_v23 = vmul.f32 %v1493_v12, %v692_v21 }
 0x1a7   : > { %v2326_v25 = vadd.f32 %v1494_v19, %v701_v23  ;;  %855 = vrot.lane.b32.xlu1 %v2322_v22, %s1974_s24  ;;  %v743_v27 = vrot.slane %v2322_v22, 2  ;;  %v730_v35 = vrot.slane %v2322_v22, 6 }
 0x1a9   : > { %v2332_v26 = vpack.c.bf16 %v2326_v25, %v2322_v22  ;;  %v744_v28 = vrot.slane %v2326_v25, 2  ;;  %v731_v34 = vrot.slane %v2326_v25, 6 }
 0x1ab   : > { %857 = vrot.lane.b32.xlu1 %v2326_v25, %s1974_s24  ;;  %756 = vrot.lane.b32.xlu0 %v2332_v26, %s1975_s17  ;;  %v746_v29 = vsel %vm745_vm3, %v743_v27, %v744_v28  ;;  %v747_v30 = vsel %vm745_vm3, %v744_v28, %v743_v27  ;;  %v734_v36 = vsel %vm732_vm5, %v731_v34, %v730_v35  ;;  %v1707_v27 = vld [vmem:[%s2537_s5 + $0x10] sm:$0x3f]   ;;  %s617_s24 = sand.u32 1, %s1954_s25  }
 0x1ac   : > { %v753_v31 = vsel %vm727_vm4, %v747_v30, 0.0  ;;  %v733_v37 = vsel %vm732_vm5, %v730_v35, %v731_v34  ;;  %v739_v38 = vsel %vm716_vm6, %v734_v36, 0.0  ;;  %v1021_v28 = vsel %vm778_vm2, %v1707_v27, 0  ;;  %s2490_s28 = scalar_lea.sflag [#allocation4], %s617_s24 }
 0x1ad   : > { %v754_v32 = vpack.c.bf16 %v753_v31, %v746_v29  ;;  %v741_v40 = vpack.c.bf16 %v733_v37, %v739_v38  ;;  %v1506_v31 = vld [vmem:[%s2539_s7 + $0x1] ss:$0 sm:$0xff] }
 0x1ae   : > { %v1508_v37 = vld [vmem:[%s2540_s8 + $0x1] ss:$0 sm:$0xff] }
 0x1af   : > { %759 = vrot.lane.b32.xlu0 %v754_v32, %s1976_s27 }
 0x219   : > { %v856_v55 = vpop.permute.xlu1 %855 }
 0x21d   : > { %v757_v39 = vpop.permute.xlu0 %756  ;;  %v858_v63 = vpop.permute.xlu1 %857 }
 0x21e   : > { %v764_v41 = vsel %vm761_vm7, %v741_v40, %v757_v39 }
 0x221   : > { %v760_v42 = vpop.permute.xlu0 %759 }
 0x222   : > { %v767_v43 = vsel %vm765_vm8, %v764_v41, %v760_v42 }
 0x223   : > { %1560 = vmatmul.mubr.msk.bf16.vlgmr.msra.gmra.mrb[0].mxu1 %vm775_vm9, %v767_v43 }
 0x224   : > { %1571 = vmatprep.mubr.msk.bf16.mxu1 %vm1973_vm0, %v1972_v0  ;;  %1570 = vmatpush3.bf16.msra.mxu1 %v1021_v28 }
 0x225   : > { %1581 = vmatprep.subr.bf16.mxu1 %v1972_v0 }
 0x2f6   : > { %v816_v47 = vpop.f32.mrb[0].mxu1 }
 0x2f7   : > { %v830_v48 = vadd.f32 %v1497_v46, %v816_v47  ;;  %v1561_v49 = vpop.f32.mrb[1].mxu1 }
 0x2f8   : > { %v819_v51 = vpop.f32.mrb[2].mxu1 }
 0x2f9   : > { %v832_v52 = vmax.f32 %v830_v48, 0.0  ;;  %v831_v53 = vadd.f32 %v1497_v46, %v819_v51  ;;  %v1562_v54 = vpop.f32.mrb[3].mxu1 }
 0x2fb   : > { %v841_v57 = vmul.f32 %v1498_v50, %v832_v52  ;;  %v833_v58 = vmax.f32 %v831_v53, 0.0 }
 0x2fd   : > { %v2376_v59 = vadd.f32 %v1499_v56, %v841_v57  ;;  %v842_v60 = vmul.f32 %v1498_v50, %v833_v58 }
 0x2ff   : > { %v861_v61 = vadd.f32 %v856_v55, %v2376_v59  ;;  %v2379_v62 = vadd.f32 %v1499_v56, %v842_v60 }
 0x301   : > { %v862_v1 = vadd.f32 %v858_v63, %v2379_v62  ;;  %v852_v4 = vpack.c.bf16 %v2379_v62, %v2376_v59  ;;  %v863_v5 = vrot.slane %v861_v61, 6  ;;  %v871_v9 = vrot.slane %v861_v61, 2  ;;  %v1710_v59 = vld [vmem:[%s2547_s15] sm:$0xff]   ;;  %v1520_v62 = vld [vmem:[#allocation8] ss:$0 sm:$0xff] }
 0x303   : > { %v864_v6 = vrot.slane %v862_v1, 6  ;;  %v870_v8 = vpack.c.bf16 %v862_v1, %v861_v61  ;;  %v872_v10 = vrot.slane %v862_v1, 2 }
 0x305   : > { %879 = vrot.lane.b32.xlu0 %v870_v8, %s1975_s17  ;;  %v873_v11 = vsel %vm745_vm3, %v871_v9, %v872_v10  ;;  %v874_v12 = vsel %vm745_vm3, %v872_v10, %v871_v9  ;;  %v865_v13 = vsel %vm732_vm5, %v863_v5, %v864_v6  ;;  %v866_v14 = vsel %vm732_vm5, %v864_v6, %v863_v5 }
 0x306   : > { %v876_v15 = vsel %vm727_vm4, %v874_v12, 0.0  ;;  %v867_v16 = vsel %vm716_vm6, %v866_v14, 0.0 }
 0x307   : > { %v877_v17 = vpack.c.bf16 %v876_v15, %v873_v11  ;;  %v869_v18 = vpack.c.bf16 %v865_v13, %v867_v16  ;;  %v1515_v11 = vld [vmem:[%s2539_s7 + $0x2] ss:$0 sm:$0xff] }
 0x309   : > { %882 = vrot.lane.b32.xlu1 %v877_v17, %s1976_s27  ;;  %976 = vrot.lane.b32.xlu0 %v2322_v22, %s1977_s3  ;;  %v1504_v22 = vld [vmem:[#allocation7 + $0x1] ss:$0 sm:$0xff] }
 0x30d   : > { %978 = vrot.lane.b32.xlu1 %v2326_v25, %s1977_s3  ;;  %s2595_s3 = sld [smem:[#allocation31_spill]] }
 0x313   : > { %s2482_s19 = scalar_lea.hbm %s2595_s3, %s1535_s21 }
 0x377   : > { %v880_v19 = vpop.permute.xlu0 %879 }
 0x378   : > { %v886_v20 = vsel %vm761_vm7, %v869_v18, %v880_v19  ;;  %v1517_v18 = vld [vmem:[%s2540_s8 + $0x2] ss:$0 sm:$0xff] }
 0x37b   : > { %v883_v21 = vpop.permute.xlu1 %882  ;;  %v977_v42 = vpop.permute.xlu0 %976 }
 0x37c   : > { %v888_v23 = vsel %vm765_vm8, %v886_v20, %v883_v21 }
 0x37d   : > { %1566 = vmatmul.mubr.msk.bf16.vlgmr.msra.gmra.mrb[4].mxu0 %vm775_vm9, %v888_v23 }
 0x37e   : > { %1577 = vmatprep.mubr.msk.bf16.mxu0 %vm1973_vm0, %v1972_v0  ;;  %1576 = vmatpush3.bf16.msra.mxu0 %v1708_v24 }
 0x37f   : > { %v979_v45 = vpop.permute.xlu1 %978  ;;  %1587 = vmatprep.subr.bf16.mxu0 %v1972_v0 }
 0x450   : > { %v936_v25 = vpop.f32.mrb[4].mxu0 }
 0x451   : > { %v951_v29 = vadd.f32 %v1504_v22, %v936_v25  ;;  %v1567_v30 = vpop.f32.mrb[5].mxu0 }
 0x452   : > { %v939_v32 = vpop.f32.mrb[6].mxu0  ;;  %v1709_v30 = vld [vmem:[%s2545_s13] sm:$0xff]  }
 0x453   : > { %v953_v34 = vmax.f32 %v951_v29, 0.0  ;;  %v952_v35 = vadd.f32 %v1504_v22, %v939_v32  ;;  %v1568_v36 = vpop.f32.mrb[7].mxu0  ;;  %v1521_v32 = vld [vmem:[#allocation10] ss:$0 sm:$0xff] }
 0x455   : > { %v963_v38 = vmul.f32 %v1506_v31, %v953_v34  ;;  %v954_v39 = vmax.f32 %v952_v35, 0.0 }
 0x457   : > { %v973_v40 = vadd.f32 %v1508_v37, %v963_v38  ;;  %v964_v41 = vmul.f32 %v1506_v31, %v954_v39  ;;  %v1522_v38 = vld [vmem:[%s2544_s12] ss:$0 sm:$0xff] }
 0x459   : > { %v982_v43 = vadd.f32 %v977_v42, %v973_v40  ;;  %v974_v44 = vadd.f32 %v1508_v37, %v964_v41 }
 0x45b   : > { %v983_v46 = vadd.f32 %v979_v45, %v974_v44  ;;  %v975_v47 = vpack.c.bf16 %v974_v44, %v973_v40  ;;  %v984_v48 = vrot.slane %v982_v43, 6  ;;  %v992_v51 = vrot.slane %v982_v43, 2 }
 0x45d   : > { %v985_v49 = vrot.slane %v983_v46, 6  ;;  %v991_v50 = vpack.c.bf16 %v983_v46, %v982_v43  ;;  %v993_v52 = vrot.slane %v983_v46, 2 }
 0x45f   : > { %1000 = vrot.lane.b32.xlu0 %v991_v50, %s1975_s17  ;;  %v994_v53 = vsel %vm745_vm3, %v992_v51, %v993_v52  ;;  %v995_v54 = vsel %vm745_vm3, %v993_v52, %v992_v51  ;;  %v986_v55 = vsel %vm732_vm5, %v984_v48, %v985_v49  ;;  %v987_v56 = vsel %vm732_vm5, %v985_v49, %v984_v48 }
 0x460   : > { %v997_v57 = vsel %vm727_vm4, %v995_v54, 0.0  ;;  %v988_v58 = vsel %vm716_vm6, %v987_v56, 0.0  ;;  %v1711_v54 = vld [vmem:[%s2547_s15 + $0x8] sm:$0xff]  }
 0x461   : > { %v998_v60 = vpack.c.bf16 %v997_v57, %v994_v53  ;;  %v990_v61 = vpack.c.bf16 %v986_v55, %v988_v58  ;;  %v1253_v55 = vld [vmem:[#allocation11] sm:$0x1] }
 0x463   : > { %1003 = vrot.lane.b32.xlu1 %v998_v60, %s1976_s27  ;;  %1098 = vrot.lane.b32.xlu0 %v975_v47, %s1975_s17  ;;  %s1487_s17 = sshll.u32 %s617_s24, 4 }
 0x464   : > { %s619_s18 = scalar_lea.vmem [#allocation13], %s1487_s17 }
 0x465   : > { %s1349_s29 = sshll.u32 %s619_s18, 4  ;;  %s2486_s29 = int_to_ptr.vmem [resolvable:$true] %s1349_s29 }
 0x466   : > { %s1884_s0 = scalar_lea.vmem %s2486_s29, 256  ;;  %p1891_p13 = scmp.lt.s32.totalorder %s2486_s29, %s1889_s16 }
 0x467   : > { %p1885_p4 = scmp.ne.s32.totalorder %s2486_s29, %s1884_s0  ;;  %p1892_p0 = scmp.lt.s32.totalorder %s1890_s26, %s1884_s0 }
 0x469   : > { %p1886_p8 = pnand %p1885_p4, %p2596_p7  ;;  %p1893_p1 = por %p1892_p0, %p1891_p13 }
 0x46b   : > { %p1887_p11 = pneg %p1886_p8 }
 0x46d   : > { %p1894_p6 = pnand %p1893_p1, %p1887_p11 }
 0x4d1   : > { %v1001_v63 = vpop.permute.xlu0 %1000 }
 0x4d2   : > { %v1007_v1 = vsel %vm761_vm7, %v990_v61, %v1001_v63 }
 0x4d5   : > { %v1004_v5 = vpop.permute.xlu1 %1003  ;;  %v1099_v27 = vpop.permute.xlu0 %1098 }
 0x4d6   : > { %v1009_v6 = vsel %vm765_vm8, %v1007_v1, %v1004_v5  ;;  %v1105_v28 = vsel %vm761_vm7, %v852_v4, %v1099_v27  ;;  %v1317_v5 = vld [vmem:[%s2593_s22] sm:$0x1] }
 0x4d7   : > { %1572 = vmatmul.mubr.msk.bf16.vlgmr.msra.gmra.mrb[4].mxu1 %vm775_vm9, %v1009_v6 }
 0x4d8   : > { %1583 = vmatprep.mubr.msk.bf16.mxu1 %vm1973_vm0, %v1972_v0  ;;  %1582 = vmatpush3.bf16.msra.mxu1 %v1709_v30 }
 0x5aa   : > { %v1057_v8 = vpop.f32.mrb[4].mxu1 }
 0x5ab   : > { %v1072_v9 = vadd.f32 %v1513_v33, %v1057_v8  ;;  %v1573_v10 = vpop.f32.mrb[5].mxu1 }
 0x5ac   : > { %v1060_v12 = vpop.f32.mrb[6].mxu1 }
 0x5ad   : > { %v1074_v13 = vmax.f32 %v1072_v9, 0.0  ;;  %v1073_v14 = vadd.f32 %v1513_v33, %v1060_v12  ;;  %v1574_v15 = vpop.f32.mrb[7].mxu1 }
 0x5af   : > { %v1084_v16 = vmul.f32 %v1515_v11, %v1074_v13  ;;  %v1075_v17 = vmax.f32 %v1073_v14, 0.0  ;;  %v1327_v13 = vsub.s32 0, %v2311_v7 }
 0x5b1   : > { %v1085_v19 = vmul.f32 %v1515_v11, %v1075_v17  ;;  %v1094_v20 = vadd.f32 %v1517_v18, %v1084_v16 }
 0x5b3   : > { %v1095_v21 = vadd.f32 %v1517_v18, %v1085_v19 }
 0x5b5   : > { %v1096_v23 = vpack.c.bf16 %v1095_v21, %v1094_v20 }
 0x5b7   : > { %1101 = vrot.lane.b32.xlu1 %v1096_v23, %s1976_s27 }
 0x629   : > { %v1102_v22 = vpop.permute.xlu1 %1101 }
 0x62a   : > { %v1107_v25 = vsel %vm765_vm8, %v1105_v28, %v1102_v22 }
 0x62b   : > { %v1109_v29 = vsel %vm775_vm9, %v1107_v25, %v2332_v26 }
 0x62c   : > { %1578 = vmatmul.mubr.msk.bf16.vlgmr.msra.gmra.mrb[8].mxu0 %vm637_vm1, %v1109_v29 }
 0x62d   : > { %1591 = vmatprep.mubr.msk.bf16.mxu0 %vm1973_vm0, %v1972_v0  ;;  %1588 = vmatpush3.bf16.msra.mxu0 %v1710_v59 }
 0x62e   : > { %1589 = vmatprep.subr.bf16.mxu0 %v1972_v0 }
 0x631   : > { %1590 = vmatpush3.bf16.msra.mxu0 %v1711_v54 }
 0x6ff   : > { %v1154_v4 = vpop.f32.mrb[8].mxu0 }
 0x700   : > { %v1168_v26 = vadd.f32 %v1520_v62, %v1154_v4  ;;  %v1579_v31 = vpop.f32.mrb[9].mxu0 }
 0x701   : > { %v1157_v34 = vpop.f32.mrb[10].mxu0 }
 0x702   : > { %v1170_v35 = vmax.f32 %v1168_v26, 0.0  ;;  %v1169_v36 = vadd.f32 %v1520_v62, %v1157_v34  ;;  %v1580_v37 = vpop.f32.mrb[11].mxu0 }
 0x704   : > { %v1179_v39 = vmul.f32 %v1521_v32, %v1170_v35  ;;  %v1171_v40 = vmax.f32 %v1169_v36, 0.0 }
 0x706   : > { %v1188_v41 = vadd.f32 %v1522_v38, %v1179_v39  ;;  %v1180_v42 = vmul.f32 %v1521_v32, %v1171_v40 }
 0x708   : > { %v1189_v43 = vadd.f32 %v1522_v38, %v1180_v42  ;;  %v1190_v0 = vsel %vm637_vm1, %v1188_v41, 0.0 }
 0x70a   : > { %v1191_v44 = vsel %vm637_vm1, %v1189_v43, 0.0 }
 0x70b   : > { %v1192_v45 = vadd.f32 %v1191_v44, %v1190_v0 }
 0x70d   : > { %v1193_v46 = vrot.slane %v1192_v45, 4 }
 0x70f   : > { %v1194_v47 = vadd.f32 %v1193_v46, %v1192_v45 }
 0x711   : > { %v1195_v48 = vrot.slane %v1194_v47, 2 }
 0x713   : > { %v1196_v49 = vadd.f32 %v1195_v48, %v1194_v47 }
 0x715   : > { %v1197_v50 = vrot.slane %v1196_v49, 1 }
 0x717   : > { %v1198_v51 = vadd.f32 %v1197_v50, %v1196_v49 }
 0x719   : > { %v1200_v52 = vmul.f32 0.0625, %v1198_v51 }
 0x71b   : > { %v1201_v53 = vpack.c.bf16 %v1200_v52, %v1200_v52 }
 0x71d   : > { %1584 = vmatmul.mubr.msk.bf16.vlgmr.msra.gmra.mrb[8].mxu1 %vm637_vm1, %v1201_v53 }
 0x7f0   : > { %v1247_v56 = vpop.f32.mrb[8].mxu1 }
 0x7f1   : > { %v1254_v57 = vadd.f32 %v1253_v55, %v1247_v56  ;;  %v1585_v58 = vpop.f32.mrb[9].mxu1 }
 0x7f2   : > { %v1250_v60 = vpop.f32.mrb[10].mxu1 }
 0x7f3   : > { %v1255_v61 = vmax.f32 %v1254_v57, 0.0  ;;  %v1586_v63 = vpop.f32.mrb[11].mxu1 }
 0x7f5   : > { %v1256_v1 = vpack.c.bf16 %v1255_v61, %v1255_v61 }
 0x7f7   : > { %1592 = vmatmul.mubr.msk.bf16.vlgmr.msra.gmra.mrb[12].mxu0 %vm1273_vm10, %v1256_v1 }
 0x8ca   : > { %v1311_v6 = vpop.f32.mrb[12].mxu0 }
 0x8cb   : > { %v1318_v24 = vadd.f32 %v1317_v5, %v1311_v6  ;;  %v1593_v33 = vpop.f32.mrb[13].mxu0 }
 0x8cc   : > { %v1314_v8 = vpop.f32.mrb[14].mxu0 }
 0x8cd   : > { %v1528_v9 = vmul.f32 -1.442695, %v1318_v24  ;;  %v1594_v10 = vpop.f32.mrb[15].mxu0 }
 0x8cf   : > { %1712 = vpow2.f32 %v1528_v9 }
 0x8d9   : > { %v1713_v11 = vpop.eup %1712 }
 0x8da   : > { %v1322_v12 = vadd.f32 1.0, %v1713_v11 }
 0x8dc   : > { %1714 = vrcp.f32 %v1322_v12 }
 0x8e6   : > { %v1715_v14 = vpop.eup %1714 }
 0x8e7   : > { %v1328_v15 = vrot.slane %v1715_v14, %v1327_v13 }
 0x8e9   : > { %v1329_v16 = vmul.f32 %v1328_v15, %v1188_v41  ;;  %v1330_v17 = vmul.f32 %v1328_v15, %v1189_v43 }
 0x8eb   : > { %v1331_v18 = vadd.f32 %v1329_v16, %v2301_v2  ;;  %v1332_v19 = vadd.f32 %v1330_v17, %v2303_v3 }
 0x8ed   : > { %1333 = vst.msk [vmem:[%s619_s18] sm:$0xff] %vm637_vm1, %v1331_v18  ;;  %1334 = vst.msk [vmem:[%s619_s18 + $0x8] sm:$0xff] %vm637_vm1, %v1332_v19 }
 0x8ee   : > { %1897 = shalt.err (!%p1894_p6)
}
 0x8ef   : > { %s1898_s1 = scalar_lea.hbm %s2482_s19, 256  ;;  %s1902_s17 = scalar_lea.hbm %s2595_s3, 512 }
 0x8f0   : > { %p1899_p5 = scmp.ne.s32.totalorder %s2482_s19, %s1898_s1  ;;  %p1903_p10 = scmp.lt.u32.totalorder %s2482_s19, %s2595_s3 }
 0x8f1   : > { %p1904_p2 = scmp.lt.u32.totalorder %s1902_s17, %s1898_s1  ;;  %p1906_p4 = scmp.lt.u32.totalorder %s1898_s1, %s2482_s19 }
 0x8f2   : > { %p1900_p9 = pnand %p1899_p5, %p2596_p7 }
 0x8f3   : > { %p1905_p3 = por %p1904_p2, %p1903_p10 }
 0x8f4   : > { %p1901_p12 = pneg %p1900_p9 }
 0x8f5   : > { %p1907_p8 = por %p1906_p4, %p1905_p3 }
 0x8f7   : > { %p1908_p11 = pnand %p1907_p8, %p1901_p12 }
 0x8f9   : > { %1911 = shalt.err (!%p1908_p11)
}
 0x8fa   : > { %s1979_s30 = smov 128  }
 0x8fb   : > { %1619 = dma.vmem_to_hbm [thread:$0]  (%p2596_p7), %s2486_s29, 256, %s2482_s19, %s2490_s28, %s1979_s30, %s1979_s30, %s1976_s27  }
 0x8fc PF: > { %s2597_s2 = sld [smem:[#allocation21_spill]]  ;;  %s2598_s0 = sld [smem:[#allocation19_spill]] }
 0x8fd   : > { %s2599_s23 = sld [smem:[#allocation25_spill]] }
 0x902   : > { %p1656_p13 = scmp.ge.s32.totalorder %s2597_s2, 2  ;;  %s1364_s16 = sand.u32 1, %s2598_s0  }
 0x903   : > { %p2600_p0 = scmp.ne.s32.totalorder %s2599_s23, 0  ;;  %s1365_s26 = scalar_lea.sflag [#allocation4], %s1364_s16 }
 0x905   : > { %p1641_p1 = pnand %p1656_p13, %p2600_p0 }
 0x907   : > { %1945 = dma.done.wait (!%p1641_p1), %s1365_s26, 256  }
 0x908   : > { %1947 = vsyncadd (!%p1641_p1), %s1365_s26, 4294967040  ;;  %s2601_s27 = sld [smem:[#allocation22_spill]]  ;;  %s2602_s1 = sld [smem:[#allocation20_spill]] }
 0x909   : > { %s2603_s26 = sld [smem:[#allocation23_spill]]  ;;  %s2604_s24 = smov %s1954_s25 }
 0x90e   : > { %p31_p6 = scmp.ge.s32.totalorder %s2601_s27, 4   ;;  %s2605_s25 = smov %s2602_s1 }
 0x910   :  { %33 = sbr.rel (!%p31_p6) target bundleno = 14 (0xe), region = 156 }
 0x917   :  { %1370 = vsyncpa [#allocation3], 1 }
 0x918   :  { %1372 = vsyncpa [#allocation3 + $0x1], 1 }
 0x919   :  { %1373 = vsyncpa [#allocation6], 1 }
 0x91a   :  { %1374 = vsyncpa [#allocation9], 1 }
 0x91b   :  { %1375 = vsyncpa [#allocation12], 1 }
 0x91c   :  { %1376 = vsyncpa [#allocation4], 1 }
 0x91d   :  { %1378 = vsyncpa [#allocation4 + $0x1], 1 }

</bundles_post_ra>
